<compile_context>
chip_gen: v6e
topology: v6e:2x2x1
jax: 0.10.0
libtpu: 0.0.40
codegen_flags: <defaults>
</compile_context>

<pallas_src>
import math
import functools

import jax
import jax.numpy as jnp
from jax import lax
from jax.experimental import pallas as pl
from jax.experimental.pallas import tpu as pltpu


def encoder_block_kernel(xq_ref, xf_ref, wq_ref, wk_ref, wv_ref, w0_ref, b0_ref,
                         w1_ref, b1_ref, w2_ref, b2_ref,
                         g1_ref, be1_ref, g2_ref, be2_ref,
                         o_ref,
                         k_scr, v_scr,
                         *, h, eps, compute_dtype, ff_tile, approx_recip):
    cd = compute_dtype
    f32 = jnp.float32

    def layer_norm(v, gamma, beta):                 # v f32, gamma/beta (1, D)
        mu = jnp.mean(v, axis=-1, keepdims=True)
        var = jnp.mean((v - mu) ** 2, axis=-1, keepdims=True)
        return (v - mu) * lax.rsqrt(var + eps) * gamma + beta

    def recip(t):                                   # EUP reciprocal in the bf16 path
        return pl.reciprocal(t, approx=True) if approx_recip else 1.0 / t

    g1, be1 = g1_ref[...], be1_ref[...]

    # ---- once per batch (first q-tile): LN1 over the full sequence + lane-dense
    # K/V projections into persistent VMEM scratch (reused by all q-tiles). ----
    @pl.when(pl.program_id(1) == 0)
    def _():
        xf = xf_ref[...].astype(f32)                                   # (S, D)
        xnf = layer_norm(xf, g1, be1).astype(cd)
        k_scr[...] = jnp.dot(xnf, wk_ref[...], preferred_element_type=cd)
        v_scr[...] = jnp.dot(xnf, wv_ref[...], preferred_element_type=cd)

    xq = xq_ref[...].astype(f32)                                       # (tq, D) residual
    tq, D = xq.shape
    dh = D // h
    scale = 1.0 / math.sqrt(dh)

    # ---- sub-block 1: x + MHA(LN1(x)) ----
    xnq = layer_norm(xq, g1, be1).astype(cd)
    q = jnp.dot(xnq, wq_ref[...], preferred_element_type=cd)           # (tq, D) lane-dense
    k = k_scr[...]                                                     # (S, D)
    v = v_scr[...]

    acc = jnp.zeros((tq, D), f32)
    # Static unroll over heads: each head's (tq, S) scores are consumed immediately
    # (softmax + AV + fold through w0 rows), so live ranges stay per-iteration.
    for hi in range(h):
        c0, c1 = hi * dh, (hi + 1) * dh
        s = lax.dot_general(q[:, c0:c1], k[:, c0:c1],                  # qh @ kh^T, no XLU transpose
                            dimension_numbers=(((1,), (1,)), ((), ())),
                            preferred_element_type=f32) * scale        # (tq, S) f32
        s = s - jnp.max(s, axis=-1, keepdims=True)
        e = jnp.exp(s)
        a = (e * recip(jnp.sum(e, axis=-1, keepdims=True))).astype(cd)
        head = jnp.dot(a, v[:, c0:c1], preferred_element_type=cd)      # (tq, dh)
        # fold through the (dh, D) row-slice of w0 -> lane-dense f32 accumulate,
        # no masked lane-offset scratch stores.
        acc = acc + jnp.dot(head, w0_ref[c0:c1, :], preferred_element_type=f32)

    x1 = xq + acc + b0_ref[...]                                        # (tq, D)

    # ---- sub-block 2: x + FFN(LN2(x)), tiled over d_ff ----
    xn2 = layer_norm(x1, g2_ref[...], be2_ref[...]).astype(cd)
    d_ff = w1_ref.shape[1]
    n_ff = d_ff // ff_tile

    def ff_step(ff, w1_j, b1_j, w2_j):
        hdn = jnp.maximum(
            jnp.dot(xn2, w1_j, preferred_element_type=f32) + b1_j, 0.0).astype(cd)
        return ff + jnp.dot(hdn, w2_j, preferred_element_type=f32)

    if n_ff <= 8:                                   # few tiles: static slices
        ff = jnp.zeros((tq, D), f32)
        for j in range(n_ff):
            j0, j1 = j * ff_tile, (j + 1) * ff_tile
            ff = ff_step(ff, w1_ref[:, j0:j1], b1_ref[:, j0:j1], w2_ref[j0:j1, :])
    else:                                           # many tiles: bounded live ranges
        def body(j, ff):
            j0 = pl.multiple_of(j * ff_tile, ff_tile)
            return ff_step(ff,
                           w1_ref[:, pl.ds(j0, ff_tile)],
                           b1_ref[:, pl.ds(j0, ff_tile)],
                           w2_ref[pl.ds(j0, ff_tile), :])
        ff = lax.fori_loop(0, n_ff, body, jnp.zeros((tq, D), f32), unroll=False)

    o_ref[...] = (x1 + ff + b2_ref[...]).astype(o_ref.dtype)


def _physical_vmem_bytes():
    """Per-core VMEM capacity; conservative fallback if the query is unavailable."""
    try:
        info = pltpu.get_tpu_info()
        for attr in ("vmem_capacity_bytes", "vmem_size_bytes", "vmem_bytes"):
            cap = getattr(info, attr, None)
            if cap:
                return int(cap)
    except Exception:
        pass
    return 64 << 20   # safe on every generation (v7x has the smallest VMEM)


def encoder_block(x, params, *, h, eps=1e-5, compute_dtype=jnp.float32,
                  q_tile=None, ff_tile=None, single_buffer_weights=True):
    N, S, D = x.shape
    d_ff = params["w1"].shape[1]
    assert D % h == 0, "d_model must be divisible by h"

    # MXU-sized defaults (256-wide on v6e/v7x); fall back to the full extent for
    # toy shapes that do not divide evenly.
    if q_tile is None:
        q_tile = 256 if (S > 256 and S % 256 == 0) else S
    if ff_tile is None:
        ff_tile = 512 if (d_ff > 512 and d_ff % 512 == 0) else d_ff
    tq, tf = q_tile, ff_tile
    assert S % tq == 0 and d_ff % tf == 0
    assert tq == S or tq % 8 == 0, "q_tile must be a multiple of 8 (f32 sublane)"
    n_q = S // tq

    cd = compute_dtype
    isz = jnp.dtype(cd).itemsize
    f32_path = jnp.dtype(cd) == jnp.dtype(jnp.float32)

    # bf16 (or f32) weights for the MXU; biases / LN params stay f32.
    wq = params["wq"].astype(cd)
    wk = params["wk"].astype(cd)
    wv = params["wv"].astype(cd)
    w0 = params["w0"].astype(cd)
    w1 = params["w1"].astype(cd)
    w2 = params["w2"].astype(cd)
    # Full-sequence (K/V) stream can be narrow; the q/residual path stays f32.
    xf = x if f32_path else x.astype(cd)

    kernel = functools.partial(
        encoder_block_kernel, h=h, eps=eps, compute_dtype=cd, ff_tile=tf,
        approx_recip=not f32_path)

    phys_vmem = _physical_vmem_bytes()

    def vmem_limit(single_buf):
        wbuf = 1 if single_buf else 2
        weight_bytes = wbuf * (4 * D * D + 2 * D * d_ff) * isz
        param_bytes = 2 * (6 * D + 2 * d_ff) * 4
        act_bytes = (2 * S * D * jnp.dtype(xf.dtype).itemsize   # xf pipeline buffers
                     + 4 * tq * D * x.dtype.itemsize            # xq + out (double-buffered)
                     + 2 * S * D * isz)                         # K/V scratch slabs
        tmp_bytes = 4 * (3 * tq * D + 3 * tq * S + 2 * tq * tf + S * D)
        need = 2 * (weight_bytes + param_bytes + act_bytes + tmp_bytes)
        return int(min(max(need, 16 << 20), (phys_vmem * 3) // 4))

    def run(single_buf):
        def wspec(shape):
            idx = lambda n, qi, _r=len(shape): (0,) * _r
            if single_buf and hasattr(pl, "Buffered"):
                try:
                    # constant index map -> fetched once; single buffer halves weight VMEM
                    return pl.BlockSpec(shape, idx, pipeline_mode=pl.Buffered(1))
                except Exception:
                    pass
            return pl.BlockSpec(shape, idx)

        return pl.pallas_call(
            kernel,
            out_shape=jax.ShapeDtypeStruct((N, S, D), x.dtype),
            grid=(N, n_q),
            in_specs=[
                pl.BlockSpec((None, tq, D), lambda n, qi: (n, qi, 0)),   # x (q-row tile)
                pl.BlockSpec((None, S, D), lambda n, qi: (n, 0, 0)),     # x (full seq, K/V)
                wspec((D, D)), wspec((D, D)), wspec((D, D)),             # wq, wk, wv
                wspec((D, D)), wspec((1, D)),                            # w0, b0
                wspec((D, d_ff)), wspec((1, d_ff)),                      # w1, b1
                wspec((d_ff, D)), wspec((1, D)),                         # w2, b2
                wspec((1, D)), wspec((1, D)),                            # gamma1, beta1
                wspec((1, D)), wspec((1, D)),                            # gamma2, beta2
            ],
            out_specs=pl.BlockSpec((None, tq, D), lambda n, qi: (n, qi, 0)),
            scratch_shapes=[pltpu.VMEM((S, D), cd),      # K = LN1(x) @ wk (per batch)
                            pltpu.VMEM((S, D), cd)],     # V = LN1(x) @ wv (per batch)
            compiler_params=pltpu.CompilerParams(
                dimension_semantics=("parallel", "arbitrary"),
                vmem_limit_bytes=vmem_limit(single_buf)),
        )(x, xf, wq, wk, wv, w0, params["b0"], w1, params["b1"], w2, params["b2"],
          params["g1"], params["be1"], params["g2"], params["be2"])

    if single_buffer_weights:
        try:
            return run(True)
        except Exception:
            pass   # Buffered(1) unsupported on this jax build -> default double buffering
    return run(False)


def reference(x, params, *, h, eps=1e-5):
    """Pure-JAX reference mirroring the PyTorch module (eval mode, mask=None)."""
    def ln(v, g, b):
        mu = jnp.mean(v, axis=-1, keepdims=True)
        var = jnp.mean((v - mu) ** 2, axis=-1, keepdims=True)
        return (v - mu) / jnp.sqrt(var + eps) * g + b

    N, S, D = x.shape
    dh = D // h
    xn = ln(x, params["g1"], params["be1"])
    q = xn @ params["wq"]
    k = xn @ params["wk"]
    v = xn @ params["wv"]
    q = q.reshape(N, S, h, dh).transpose(0, 2, 1, 3)
    k = k.reshape(N, S, h, dh).transpose(0, 2, 1, 3)
    v = v.reshape(N, S, h, dh).transpose(0, 2, 1, 3)
    s = jnp.einsum("nhqd,nhkd->nhqk", q, k) / math.sqrt(dh)
    a = jax.nn.softmax(s, axis=-1)
    o = jnp.einsum("nhqk,nhkd->nhqd", a, v).transpose(0, 2, 1, 3).reshape(N, S, D)
    o = o @ params["w0"] + params["b0"]
    x = x + o
    xn2 = ln(x, params["g2"], params["be2"])
    hdn = jax.nn.relu(xn2 @ params["w1"] + params["b1"])
    ff = hdn @ params["w2"] + params["b2"]
    return x + ff


def init_params(key, d_model, d_ff):
    ks = jax.random.split(key, 8)
    u = lambda k, shape, fan_in: jax.random.uniform(
        k, shape, jnp.float32, -1.0 / math.sqrt(fan_in), 1.0 / math.sqrt(fan_in))
    return {
        # Linear weights stored as (in, out) i.e. already transposed vs. torch.
        "wq": u(ks[0], (d_model, d_model), d_model),
        "wk": u(ks[1], (d_model, d_model), d_model),
        "wv": u(ks[2], (d_model, d_model), d_model),
        "w0": u(ks[3], (d_model, d_model), d_model),
        "b0": u(ks[4], (1, d_model), d_model),
        "w1": u(ks[5], (d_model, d_ff), d_model),
        "b1": u(ks[6], (1, d_ff), d_model),
        "w2": u(ks[7], (d_ff, d_model), d_ff),
        "b2": jnp.zeros((1, d_model), jnp.float32),
        # LayerNorm defaults: gamma=1, beta=0
        "g1": jnp.ones((1, d_model), jnp.float32),
        "be1": jnp.zeros((1, d_model), jnp.float32),
        "g2": jnp.ones((1, d_model), jnp.float32),
        "be2": jnp.zeros((1, d_model), jnp.float32),
    }


if __name__ == "__main__":
    N, S, D, H, D_FF = 2, 8, 32, 4, 64
    key = jax.random.PRNGKey(0)
    kx, kp, kx2 = jax.random.split(key, 3)
    x = jax.random.normal(kx, (N, S, D), jnp.float32)
    params = init_params(kp, D, D_FF)
    ref = reference(x, params, h=H)

    # 1) f32 compute path — tight tolerance.
    out = jax.block_until_ready(encoder_block(x, params, h=H))
    assert out.shape == (N, S, D)
    assert jnp.allclose(out, ref, atol=1e-4, rtol=1e-4), \
        f"f32 max abs diff {float(jnp.max(jnp.abs(out - ref)))}"

    # 2) bf16 matmuls + approx reciprocal (perf path), FFN tiled over d_ff.
    out_bf = jax.block_until_ready(
        encoder_block(x, params, h=H, compute_dtype=jnp.bfloat16, ff_tile=32))
    assert jnp.allclose(out_bf, ref, atol=5e-2, rtol=5e-2), \
        f"bf16 max abs diff {float(jnp.max(jnp.abs(out_bf - ref)))}"

    # 3) Multiple q-row tiles — exercises the per-batch K/V scratch hoisting
    #    (qi axis is a sequential carry). Tight tolerance.
    S2 = 16
    x2 = jax.random.normal(kx2, (N, S2, D), jnp.float32)
    ref2 = reference(x2, params, h=H)
    out2 = jax.block_until_ready(
        encoder_block(x2, params, h=H, q_tile=8, ff_tile=32))
    assert jnp.allclose(out2, ref2, atol=1e-4, rtol=1e-4), \
        f"q-tiled max abs diff {float(jnp.max(jnp.abs(out2 - ref2)))}"

    print("KERNEL_OK")
</pallas_src>

<mosaic_0001>
module attributes {stable_mosaic.version = 11 : i64} {
  func.func @encoder_block_kernel(%arg0: i32, %arg1: i32, %arg2: memref<1x8x32xf32, #tpu.memory_space<vmem>>, %arg3: memref<1x8x32xf32, #tpu.memory_space<vmem>>, %arg4: memref<32x32xf32, #tpu.memory_space<vmem>>, %arg5: memref<32x32xf32, #tpu.memory_space<vmem>>, %arg6: memref<32x32xf32, #tpu.memory_space<vmem>>, %arg7: memref<32x32xf32, #tpu.memory_space<vmem>>, %arg8: memref<1x32xf32, #tpu.memory_space<vmem>>, %arg9: memref<32x64xf32, #tpu.memory_space<vmem>>, %arg10: memref<1x64xf32, #tpu.memory_space<vmem>>, %arg11: memref<64x32xf32, #tpu.memory_space<vmem>>, %arg12: memref<1x32xf32, #tpu.memory_space<vmem>>, %arg13: memref<1x32xf32, #tpu.memory_space<vmem>>, %arg14: memref<1x32xf32, #tpu.memory_space<vmem>>, %arg15: memref<1x32xf32, #tpu.memory_space<vmem>>, %arg16: memref<1x32xf32, #tpu.memory_space<vmem>>, %arg17: memref<1x8x32xf32, #tpu.memory_space<vmem>>, %arg18: memref<8x32xf32, #tpu.memory_space<vmem>>, %arg19: memref<8x32xf32, #tpu.memory_space<vmem>>) attributes {dimension_semantics = [#tpu.dimension_semantics<parallel>, #tpu.dimension_semantics<arbitrary>], iteration_bounds = array<i64: 2, 1>, scalar_prefetch = 0 : i64, scratch_operands = 2 : i64, tpu.core_type = #tpu.core_type<tc>, window_params = [{transform_indices = @transform_0, window_bounds = array<i64: 1, 8, 32>}, {transform_indices = @transform_1, window_bounds = array<i64: 1, 8, 32>}, {pipeline_mode = #tpu.pipeline_mode<synchronous>, transform_indices = @transform_2, window_bounds = array<i64: 32, 32>}, {pipeline_mode = #tpu.pipeline_mode<synchronous>, transform_indices = @transform_3, window_bounds = array<i64: 32, 32>}, {pipeline_mode = #tpu.pipeline_mode<synchronous>, transform_indices = @transform_4, window_bounds = array<i64: 32, 32>}, {pipeline_mode = #tpu.pipeline_mode<synchronous>, transform_indices = @transform_5, window_bounds = array<i64: 32, 32>}, {pipeline_mode = #tpu.pipeline_mode<synchronous>, transform_indices = @transform_6, window_bounds = array<i64: 1, 32>}, {pipeline_mode = #tpu.pipeline_mode<synchronous>, transform_indices = @transform_7, window_bounds = array<i64: 32, 64>}, {pipeline_mode = #tpu.pipeline_mode<synchronous>, transform_indices = @transform_8, window_bounds = array<i64: 1, 64>}, {pipeline_mode = #tpu.pipeline_mode<synchronous>, transform_indices = @transform_9, window_bounds = array<i64: 64, 32>}, {pipeline_mode = #tpu.pipeline_mode<synchronous>, transform_indices = @transform_10, window_bounds = array<i64: 1, 32>}, {pipeline_mode = #tpu.pipeline_mode<synchronous>, transform_indices = @transform_11, window_bounds = array<i64: 1, 32>}, {pipeline_mode = #tpu.pipeline_mode<synchronous>, transform_indices = @transform_12, window_bounds = array<i64: 1, 32>}, {pipeline_mode = #tpu.pipeline_mode<synchronous>, transform_indices = @transform_13, window_bounds = array<i64: 1, 32>}, {pipeline_mode = #tpu.pipeline_mode<synchronous>, transform_indices = @transform_14, window_bounds = array<i64: 1, 32>}, {transform_indices = @transform_15, window_bounds = array<i64: 1, 8, 32>}]} {
    %c0 = arith.constant 0 : index
    %c0_0 = arith.constant 0 : index
    %0 = vector.load %arg13[%c0, %c0_0] : memref<1x32xf32, #tpu.memory_space<vmem>>, vector<1x32xf32>
    %c0_1 = arith.constant 0 : index
    %c0_2 = arith.constant 0 : index
    %1 = vector.load %arg14[%c0_1, %c0_2] : memref<1x32xf32, #tpu.memory_space<vmem>>, vector<1x32xf32>
    %c0_i32 = arith.constant 0 : i32
    %2 = arith.cmpi eq, %arg1, %c0_i32 : i32
    %3 = arith.extui %2 : i1 to i32
    %c0_i32_3 = arith.constant 0 : i32
    %4 = arith.cmpi ne, %3, %c0_i32_3 : i32
    scf.if %4 {
      %c0_78 = arith.constant 0 : index
      %c0_79 = arith.constant 0 : index
      %c0_80 = arith.constant 0 : index
      %164 = vector.load %arg3[%c0_78, %c0_79, %c0_80] : memref<1x8x32xf32, #tpu.memory_space<vmem>>, vector<1x8x32xf32>
      %165 = vector.shape_cast %164 : vector<1x8x32xf32> to vector<8x32xf32>
      %cst_81 = arith.constant dense<0.000000e+00> : vector<8xf32>
      %166 = vector.multi_reduction <add>, %165, %cst_81 [1] : vector<8x32xf32> to vector<8xf32>
      %167 = vector.shape_cast %166 : vector<8xf32> to vector<8x1xf32>
      %cst_82 = arith.constant 3.200000e+01 : f32
      %168 = vector.broadcast %cst_82 : f32 to vector<8x1xf32>
      %169 = arith.divf %167, %168 : vector<8x1xf32>
      %170 = vector.broadcast %169 : vector<8x1xf32> to vector<8x32xf32>
      %171 = arith.subf %165, %170 : vector<8x32xf32>
      %172 = arith.mulf %171, %171 : vector<8x32xf32>
      %cst_83 = arith.constant dense<0.000000e+00> : vector<8xf32>
      %173 = vector.multi_reduction <add>, %172, %cst_83 [1] : vector<8x32xf32> to vector<8xf32>
      %174 = vector.shape_cast %173 : vector<8xf32> to vector<8x1xf32>
      %cst_84 = arith.constant 3.200000e+01 : f32
      %175 = vector.broadcast %cst_84 : f32 to vector<8x1xf32>
      %176 = arith.divf %174, %175 : vector<8x1xf32>
      %177 = vector.broadcast %169 : vector<8x1xf32> to vector<8x32xf32>
      %178 = arith.subf %165, %177 : vector<8x32xf32>
      %cst_85 = arith.constant 9.99999974E-6 : f32
      %179 = vector.broadcast %cst_85 : f32 to vector<8x1xf32>
      %180 = arith.addf %176, %179 : vector<8x1xf32>
      %181 = math.rsqrt %180 : vector<8x1xf32>
      %182 = vector.broadcast %181 : vector<8x1xf32> to vector<8x32xf32>
      %183 = arith.mulf %178, %182 : vector<8x32xf32>
      %184 = vector.broadcast %0 : vector<1x32xf32> to vector<8x32xf32>
      %185 = arith.mulf %183, %184 : vector<8x32xf32>
      %186 = vector.broadcast %1 : vector<1x32xf32> to vector<8x32xf32>
      %187 = arith.addf %185, %186 : vector<8x32xf32>
      %c0_86 = arith.constant 0 : index
      %c0_87 = arith.constant 0 : index
      %188 = vector.load %arg5[%c0_86, %c0_87] : memref<32x32xf32, #tpu.memory_space<vmem>>, vector<32x32xf32>
      %cst_88 = arith.constant dense<0.000000e+00> : vector<8x32xf32>
      %189 = tpu.matmul %187, %188, %cst_88 {dimension_numbers = #tpu.dot_dimension_numbers<[1], [0], [0], [1], [0, 0, 1, 1], [], []>} : vector<8x32xf32>, vector<32x32xf32>, vector<8x32xf32> -> vector<8x32xf32>
      %c0_89 = arith.constant 0 : index
      %c0_90 = arith.constant 0 : index
      %190 = vector.load %arg18[%c0_89, %c0_90] : memref<8x32xf32, #tpu.memory_space<vmem>>, vector<8x32xf32>
      tpu.vector_store %arg18[%c0_89, %c0_90], %189 {strides = array<i32>} : memref<8x32xf32, #tpu.memory_space<vmem>>, vector<8x32xf32>,
      %c0_91 = arith.constant 0 : index
      %c0_92 = arith.constant 0 : index
      %191 = vector.load %arg6[%c0_91, %c0_92] : memref<32x32xf32, #tpu.memory_space<vmem>>, vector<32x32xf32>
      %cst_93 = arith.constant dense<0.000000e+00> : vector<8x32xf32>
      %192 = tpu.matmul %187, %191, %cst_93 {dimension_numbers = #tpu.dot_dimension_numbers<[1], [0], [0], [1], [0, 0, 1, 1], [], []>} : vector<8x32xf32>, vector<32x32xf32>, vector<8x32xf32> -> vector<8x32xf32>
      %c0_94 = arith.constant 0 : index
      %c0_95 = arith.constant 0 : index
      %193 = vector.load %arg19[%c0_94, %c0_95] : memref<8x32xf32, #tpu.memory_space<vmem>>, vector<8x32xf32>
      tpu.vector_store %arg19[%c0_94, %c0_95], %192 {strides = array<i32>} : memref<8x32xf32, #tpu.memory_space<vmem>>, vector<8x32xf32>,
    } else {
    }
    %c0_4 = arith.constant 0 : index
    %c0_5 = arith.constant 0 : index
    %c0_6 = arith.constant 0 : index
    %5 = vector.load %arg2[%c0_4, %c0_5, %c0_6] : memref<1x8x32xf32, #tpu.memory_space<vmem>>, vector<1x8x32xf32>
    %6 = vector.shape_cast %5 : vector<1x8x32xf32> to vector<8x32xf32>
    %cst = arith.constant dense<0.000000e+00> : vector<8xf32>
    %7 = vector.multi_reduction <add>, %6, %cst [1] : vector<8x32xf32> to vector<8xf32>
    %8 = vector.shape_cast %7 : vector<8xf32> to vector<8x1xf32>
    %cst_7 = arith.constant 3.200000e+01 : f32
    %9 = vector.broadcast %cst_7 : f32 to vector<8x1xf32>
    %10 = arith.divf %8, %9 : vector<8x1xf32>
    %11 = vector.broadcast %10 : vector<8x1xf32> to vector<8x32xf32>
    %12 = arith.subf %6, %11 : vector<8x32xf32>
    %13 = arith.mulf %12, %12 : vector<8x32xf32>
    %cst_8 = arith.constant dense<0.000000e+00> : vector<8xf32>
    %14 = vector.multi_reduction <add>, %13, %cst_8 [1] : vector<8x32xf32> to vector<8xf32>
    %15 = vector.shape_cast %14 : vector<8xf32> to vector<8x1xf32>
    %cst_9 = arith.constant 3.200000e+01 : f32
    %16 = vector.broadcast %cst_9 : f32 to vector<8x1xf32>
    %17 = arith.divf %15, %16 : vector<8x1xf32>
    %18 = vector.broadcast %10 : vector<8x1xf32> to vector<8x32xf32>
    %19 = arith.subf %6, %18 : vector<8x32xf32>
    %cst_10 = arith.constant 9.99999974E-6 : f32
    %20 = vector.broadcast %cst_10 : f32 to vector<8x1xf32>
    %21 = arith.addf %17, %20 : vector<8x1xf32>
    %22 = math.rsqrt %21 : vector<8x1xf32>
    %23 = vector.broadcast %22 : vector<8x1xf32> to vector<8x32xf32>
    %24 = arith.mulf %19, %23 : vector<8x32xf32>
    %25 = vector.broadcast %0 : vector<1x32xf32> to vector<8x32xf32>
    %26 = arith.mulf %24, %25 : vector<8x32xf32>
    %27 = vector.broadcast %1 : vector<1x32xf32> to vector<8x32xf32>
    %28 = arith.addf %26, %27 : vector<8x32xf32>
    %c0_11 = arith.constant 0 : index
    %c0_12 = arith.constant 0 : index
    %29 = vector.load %arg4[%c0_11, %c0_12] : memref<32x32xf32, #tpu.memory_space<vmem>>, vector<32x32xf32>
    %cst_13 = arith.constant dense<0.000000e+00> : vector<8x32xf32>
    %30 = tpu.matmul %28, %29, %cst_13 {dimension_numbers = #tpu.dot_dimension_numbers<[1], [0], [0], [1], [0, 0, 1, 1], [], []>} : vector<8x32xf32>, vector<32x32xf32>, vector<8x32xf32> -> vector<8x32xf32>
    %c0_14 = arith.constant 0 : index
    %c0_15 = arith.constant 0 : index
    %31 = vector.load %arg18[%c0_14, %c0_15] : memref<8x32xf32, #tpu.memory_space<vmem>>, vector<8x32xf32>
    %c0_16 = arith.constant 0 : index
    %c0_17 = arith.constant 0 : index
    %32 = vector.load %arg19[%c0_16, %c0_17] : memref<8x32xf32, #tpu.memory_space<vmem>>, vector<8x32xf32>
    %cst_18 = arith.constant 0.000000e+00 : f32
    %33 = vector.broadcast %cst_18 : f32 to vector<8x32xf32>
    %34 = vector.extract_strided_slice %30 {offsets = [0, 0], sizes = [8, 8], strides = [1, 1]} : vector<8x32xf32> to vector<8x8xf32>
    %35 = vector.extract_strided_slice %31 {offsets = [0, 0], sizes = [8, 8], strides = [1, 1]} : vector<8x32xf32> to vector<8x8xf32>
    %cst_19 = arith.constant dense<0.000000e+00> : vector<8x8xf32>
    %36 = tpu.matmul %34, %35, %cst_19 {dimension_numbers = #tpu.dot_dimension_numbers<[1], [1], [0], [0], [0, 0, 1, 0], [], []>} : vector<8x8xf32>, vector<8x8xf32>, vector<8x8xf32> -> vector<8x8xf32>
    %cst_20 = arith.constant 0.353553385 : f32
    %37 = vector.broadcast %cst_20 : f32 to vector<8x8xf32>
    %38 = arith.mulf %36, %37 : vector<8x8xf32>
    %cst_21 = arith.constant dense<0xFF800000> : vector<8xf32>
    %39 = vector.multi_reduction <maximumf>, %38, %cst_21 [1] : vector<8x8xf32> to vector<8xf32>
    %40 = vector.shape_cast %39 : vector<8xf32> to vector<8x1xf32>
    %41 = vector.broadcast %40 : vector<8x1xf32> to vector<8x8xf32>
    %42 = arith.subf %38, %41 : vector<8x8xf32>
    %43 = math.exp %42 : vector<8x8xf32>
    %cst_22 = arith.constant dense<0.000000e+00> : vector<8xf32>
    %44 = vector.multi_reduction <add>, %43, %cst_22 [1] : vector<8x8xf32> to vector<8xf32>
    %45 = vector.shape_cast %44 : vector<8xf32> to vector<8x1xf32>
    %cst_23 = arith.constant 1.000000e+00 : f32
    %46 = vector.broadcast %cst_23 : f32 to vector<8x1xf32>
    %47 = arith.divf %46, %45 : vector<8x1xf32>
    %48 = vector.broadcast %47 : vector<8x1xf32> to vector<8x8xf32>
    %49 = arith.mulf %43, %48 : vector<8x8xf32>
    %50 = vector.extract_strided_slice %32 {offsets = [0, 0], sizes = [8, 8], strides = [1, 1]} : vector<8x32xf32> to vector<8x8xf32>
    %cst_24 = arith.constant dense<0.000000e+00> : vector<8x8xf32>
    %51 = tpu.matmul %49, %50, %cst_24 {dimension_numbers = #tpu.dot_dimension_numbers<[1], [0], [0], [1], [0, 0, 1, 1], [], []>} : vector<8x8xf32>, vector<8x8xf32>, vector<8x8xf32> -> vector<8x8xf32>
    %c0_25 = arith.constant 0 : index
    %c0_26 = arith.constant 0 : index
    %52 = vector.load %arg7[%c0_25, %c0_26] : memref<32x32xf32, #tpu.memory_space<vmem>>, vector<8x32xf32>
    %cst_27 = arith.constant dense<0.000000e+00> : vector<8x32xf32>
    %53 = tpu.matmul %51, %52, %cst_27 {dimension_numbers = #tpu.dot_dimension_numbers<[1], [0], [0], [1], [0, 0, 1, 1], [], []>} : vector<8x8xf32>, vector<8x32xf32>, vector<8x32xf32> -> vector<8x32xf32>
    %54 = arith.addf %33, %53 : vector<8x32xf32>
    %55 = vector.extract_strided_slice %30 {offsets = [0, 8], sizes = [8, 8], strides = [1, 1]} : vector<8x32xf32> to vector<8x8xf32>
    %56 = vector.extract_strided_slice %31 {offsets = [0, 8], sizes = [8, 8], strides = [1, 1]} : vector<8x32xf32> to vector<8x8xf32>
    %cst_28 = arith.constant dense<0.000000e+00> : vector<8x8xf32>
    %57 = tpu.matmul %55, %56, %cst_28 {dimension_numbers = #tpu.dot_dimension_numbers<[1], [1], [0], [0], [0, 0, 1, 0], [], []>} : vector<8x8xf32>, vector<8x8xf32>, vector<8x8xf32> -> vector<8x8xf32>
    %cst_29 = arith.constant 0.353553385 : f32
    %58 = vector.broadcast %cst_29 : f32 to vector<8x8xf32>
    %59 = arith.mulf %57, %58 : vector<8x8xf32>
    %cst_30 = arith.constant dense<0xFF800000> : vector<8xf32>
    %60 = vector.multi_reduction <maximumf>, %59, %cst_30 [1] : vector<8x8xf32> to vector<8xf32>
    %61 = vector.shape_cast %60 : vector<8xf32> to vector<8x1xf32>
    %62 = vector.broadcast %61 : vector<8x1xf32> to vector<8x8xf32>
    %63 = arith.subf %59, %62 : vector<8x8xf32>
    %64 = math.exp %63 : vector<8x8xf32>
    %cst_31 = arith.constant dense<0.000000e+00> : vector<8xf32>
    %65 = vector.multi_reduction <add>, %64, %cst_31 [1] : vector<8x8xf32> to vector<8xf32>
    %66 = vector.shape_cast %65 : vector<8xf32> to vector<8x1xf32>
    %cst_32 = arith.constant 1.000000e+00 : f32
    %67 = vector.broadcast %cst_32 : f32 to vector<8x1xf32>
    %68 = arith.divf %67, %66 : vector<8x1xf32>
    %69 = vector.broadcast %68 : vector<8x1xf32> to vector<8x8xf32>
    %70 = arith.mulf %64, %69 : vector<8x8xf32>
    %71 = vector.extract_strided_slice %32 {offsets = [0, 8], sizes = [8, 8], strides = [1, 1]} : vector<8x32xf32> to vector<8x8xf32>
    %cst_33 = arith.constant dense<0.000000e+00> : vector<8x8xf32>
    %72 = tpu.matmul %70, %71, %cst_33 {dimension_numbers = #tpu.dot_dimension_numbers<[1], [0], [0], [1], [0, 0, 1, 1], [], []>} : vector<8x8xf32>, vector<8x8xf32>, vector<8x8xf32> -> vector<8x8xf32>
    %c8 = arith.constant 8 : index
    %c0_34 = arith.constant 0 : index
    %73 = vector.load %arg7[%c8, %c0_34] : memref<32x32xf32, #tpu.memory_space<vmem>>, vector<8x32xf32>
    %cst_35 = arith.constant dense<0.000000e+00> : vector<8x32xf32>
    %74 = tpu.matmul %72, %73, %cst_35 {dimension_numbers = #tpu.dot_dimension_numbers<[1], [0], [0], [1], [0, 0, 1, 1], [], []>} : vector<8x8xf32>, vector<8x32xf32>, vector<8x32xf32> -> vector<8x32xf32>
    %75 = arith.addf %54, %74 : vector<8x32xf32>
    %76 = vector.extract_strided_slice %30 {offsets = [0, 16], sizes = [8, 8], strides = [1, 1]} : vector<8x32xf32> to vector<8x8xf32>
    %77 = vector.extract_strided_slice %31 {offsets = [0, 16], sizes = [8, 8], strides = [1, 1]} : vector<8x32xf32> to vector<8x8xf32>
    %cst_36 = arith.constant dense<0.000000e+00> : vector<8x8xf32>
    %78 = tpu.matmul %76, %77, %cst_36 {dimension_numbers = #tpu.dot_dimension_numbers<[1], [1], [0], [0], [0, 0, 1, 0], [], []>} : vector<8x8xf32>, vector<8x8xf32>, vector<8x8xf32> -> vector<8x8xf32>
    %cst_37 = arith.constant 0.353553385 : f32
    %79 = vector.broadcast %cst_37 : f32 to vector<8x8xf32>
    %80 = arith.mulf %78, %79 : vector<8x8xf32>
    %cst_38 = arith.constant dense<0xFF800000> : vector<8xf32>
    %81 = vector.multi_reduction <maximumf>, %80, %cst_38 [1] : vector<8x8xf32> to vector<8xf32>
    %82 = vector.shape_cast %81 : vector<8xf32> to vector<8x1xf32>
    %83 = vector.broadcast %82 : vector<8x1xf32> to vector<8x8xf32>
    %84 = arith.subf %80, %83 : vector<8x8xf32>
    %85 = math.exp %84 : vector<8x8xf32>
    %cst_39 = arith.constant dense<0.000000e+00> : vector<8xf32>
    %86 = vector.multi_reduction <add>, %85, %cst_39 [1] : vector<8x8xf32> to vector<8xf32>
    %87 = vector.shape_cast %86 : vector<8xf32> to vector<8x1xf32>
    %cst_40 = arith.constant 1.000000e+00 : f32
    %88 = vector.broadcast %cst_40 : f32 to vector<8x1xf32>
    %89 = arith.divf %88, %87 : vector<8x1xf32>
    %90 = vector.broadcast %89 : vector<8x1xf32> to vector<8x8xf32>
    %91 = arith.mulf %85, %90 : vector<8x8xf32>
    %92 = vector.extract_strided_slice %32 {offsets = [0, 16], sizes = [8, 8], strides = [1, 1]} : vector<8x32xf32> to vector<8x8xf32>
    %cst_41 = arith.constant dense<0.000000e+00> : vector<8x8xf32>
    %93 = tpu.matmul %91, %92, %cst_41 {dimension_numbers = #tpu.dot_dimension_numbers<[1], [0], [0], [1], [0, 0, 1, 1], [], []>} : vector<8x8xf32>, vector<8x8xf32>, vector<8x8xf32> -> vector<8x8xf32>
    %c16 = arith.constant 16 : index
    %c0_42 = arith.constant 0 : index
    %94 = vector.load %arg7[%c16, %c0_42] : memref<32x32xf32, #tpu.memory_space<vmem>>, vector<8x32xf32>
    %cst_43 = arith.constant dense<0.000000e+00> : vector<8x32xf32>
    %95 = tpu.matmul %93, %94, %cst_43 {dimension_numbers = #tpu.dot_dimension_numbers<[1], [0], [0], [1], [0, 0, 1, 1], [], []>} : vector<8x8xf32>, vector<8x32xf32>, vector<8x32xf32> -> vector<8x32xf32>
    %96 = arith.addf %75, %95 : vector<8x32xf32>
    %97 = vector.extract_strided_slice %30 {offsets = [0, 24], sizes = [8, 8], strides = [1, 1]} : vector<8x32xf32> to vector<8x8xf32>
    %98 = vector.extract_strided_slice %31 {offsets = [0, 24], sizes = [8, 8], strides = [1, 1]} : vector<8x32xf32> to vector<8x8xf32>
    %cst_44 = arith.constant dense<0.000000e+00> : vector<8x8xf32>
    %99 = tpu.matmul %97, %98, %cst_44 {dimension_numbers = #tpu.dot_dimension_numbers<[1], [1], [0], [0], [0, 0, 1, 0], [], []>} : vector<8x8xf32>, vector<8x8xf32>, vector<8x8xf32> -> vector<8x8xf32>
    %cst_45 = arith.constant 0.353553385 : f32
    %100 = vector.broadcast %cst_45 : f32 to vector<8x8xf32>
    %101 = arith.mulf %99, %100 : vector<8x8xf32>
    %cst_46 = arith.constant dense<0xFF800000> : vector<8xf32>
    %102 = vector.multi_reduction <maximumf>, %101, %cst_46 [1] : vector<8x8xf32> to vector<8xf32>
    %103 = vector.shape_cast %102 : vector<8xf32> to vector<8x1xf32>
    %104 = vector.broadcast %103 : vector<8x1xf32> to vector<8x8xf32>
    %105 = arith.subf %101, %104 : vector<8x8xf32>
    %106 = math.exp %105 : vector<8x8xf32>
    %cst_47 = arith.constant dense<0.000000e+00> : vector<8xf32>
    %107 = vector.multi_reduction <add>, %106, %cst_47 [1] : vector<8x8xf32> to vector<8xf32>
    %108 = vector.shape_cast %107 : vector<8xf32> to vector<8x1xf32>
    %cst_48 = arith.constant 1.000000e+00 : f32
    %109 = vector.broadcast %cst_48 : f32 to vector<8x1xf32>
    %110 = arith.divf %109, %108 : vector<8x1xf32>
    %111 = vector.broadcast %110 : vector<8x1xf32> to vector<8x8xf32>
    %112 = arith.mulf %106, %111 : vector<8x8xf32>
    %113 = vector.extract_strided_slice %32 {offsets = [0, 24], sizes = [8, 8], strides = [1, 1]} : vector<8x32xf32> to vector<8x8xf32>
    %cst_49 = arith.constant dense<0.000000e+00> : vector<8x8xf32>
    %114 = tpu.matmul %112, %113, %cst_49 {dimension_numbers = #tpu.dot_dimension_numbers<[1], [0], [0], [1], [0, 0, 1, 1], [], []>} : vector<8x8xf32>, vector<8x8xf32>, vector<8x8xf32> -> vector<8x8xf32>
    %c24 = arith.constant 24 : index
    %c0_50 = arith.constant 0 : index
    %115 = vector.load %arg7[%c24, %c0_50] : memref<32x32xf32, #tpu.memory_space<vmem>>, vector<8x32xf32>
    %cst_51 = arith.constant dense<0.000000e+00> : vector<8x32xf32>
    %116 = tpu.matmul %114, %115, %cst_51 {dimension_numbers = #tpu.dot_dimension_numbers<[1], [0], [0], [1], [0, 0, 1, 1], [], []>} : vector<8x8xf32>, vector<8x32xf32>, vector<8x32xf32> -> vector<8x32xf32>
    %117 = arith.addf %96, %116 : vector<8x32xf32>
    %118 = arith.addf %6, %117 : vector<8x32xf32>
    %c0_52 = arith.constant 0 : index
    %c0_53 = arith.constant 0 : index
    %119 = vector.load %arg8[%c0_52, %c0_53] : memref<1x32xf32, #tpu.memory_space<vmem>>, vector<1x32xf32>
    %120 = vector.broadcast %119 : vector<1x32xf32> to vector<8x32xf32>
    %121 = arith.addf %118, %120 : vector<8x32xf32>
    %c0_54 = arith.constant 0 : index
    %c0_55 = arith.constant 0 : index
    %122 = vector.load %arg15[%c0_54, %c0_55] : memref<1x32xf32, #tpu.memory_space<vmem>>, vector<1x32xf32>
    %c0_56 = arith.constant 0 : index
    %c0_57 = arith.constant 0 : index
    %123 = vector.load %arg16[%c0_56, %c0_57] : memref<1x32xf32, #tpu.memory_space<vmem>>, vector<1x32xf32>
    %cst_58 = arith.constant dense<0.000000e+00> : vector<8xf32>
    %124 = vector.multi_reduction <add>, %121, %cst_58 [1] : vector<8x32xf32> to vector<8xf32>
    %125 = vector.shape_cast %124 : vector<8xf32> to vector<8x1xf32>
    %cst_59 = arith.constant 3.200000e+01 : f32
    %126 = vector.broadcast %cst_59 : f32 to vector<8x1xf32>
    %127 = arith.divf %125, %126 : vector<8x1xf32>
    %128 = vector.broadcast %127 : vector<8x1xf32> to vector<8x32xf32>
    %129 = arith.subf %121, %128 : vector<8x32xf32>
    %130 = arith.mulf %129, %129 : vector<8x32xf32>
    %cst_60 = arith.constant dense<0.000000e+00> : vector<8xf32>
    %131 = vector.multi_reduction <add>, %130, %cst_60 [1] : vector<8x32xf32> to vector<8xf32>
    %132 = vector.shape_cast %131 : vector<8xf32> to vector<8x1xf32>
    %cst_61 = arith.constant 3.200000e+01 : f32
    %133 = vector.broadcast %cst_61 : f32 to vector<8x1xf32>
    %134 = arith.divf %132, %133 : vector<8x1xf32>
    %135 = vector.broadcast %127 : vector<8x1xf32> to vector<8x32xf32>
    %136 = arith.subf %121, %135 : vector<8x32xf32>
    %cst_62 = arith.constant 9.99999974E-6 : f32
    %137 = vector.broadcast %cst_62 : f32 to vector<8x1xf32>
    %138 = arith.addf %134, %137 : vector<8x1xf32>
    %139 = math.rsqrt %138 : vector<8x1xf32>
    %140 = vector.broadcast %139 : vector<8x1xf32> to vector<8x32xf32>
    %141 = arith.mulf %136, %140 : vector<8x32xf32>
    %142 = vector.broadcast %122 : vector<1x32xf32> to vector<8x32xf32>
    %143 = arith.mulf %141, %142 : vector<8x32xf32>
    %144 = vector.broadcast %123 : vector<1x32xf32> to vector<8x32xf32>
    %145 = arith.addf %143, %144 : vector<8x32xf32>
    %cst_63 = arith.constant 0.000000e+00 : f32
    %146 = vector.broadcast %cst_63 : f32 to vector<8x32xf32>
    %c0_64 = arith.constant 0 : index
    %c0_65 = arith.constant 0 : index
    %147 = vector.load %arg9[%c0_64, %c0_65] : memref<32x64xf32, #tpu.memory_space<vmem>>, vector<32x64xf32>
    %c0_66 = arith.constant 0 : index
    %c0_67 = arith.constant 0 : index
    %148 = vector.load %arg10[%c0_66, %c0_67] : memref<1x64xf32, #tpu.memory_space<vmem>>, vector<1x64xf32>
    %c0_68 = arith.constant 0 : index
    %c0_69 = arith.constant 0 : index
    %149 = vector.load %arg11[%c0_68, %c0_69] : memref<64x32xf32, #tpu.memory_space<vmem>>, vector<64x32xf32>
    %cst_70 = arith.constant dense<0.000000e+00> : vector<8x64xf32>
    %150 = tpu.matmul %145, %147, %cst_70 {dimension_numbers = #tpu.dot_dimension_numbers<[1], [0], [0], [1], [0, 0, 1, 1], [], []>} : vector<8x32xf32>, vector<32x64xf32>, vector<8x64xf32> -> vector<8x64xf32>
    %151 = vector.broadcast %148 : vector<1x64xf32> to vector<8x64xf32>
    %152 = arith.addf %150, %151 : vector<8x64xf32>
    %cst_71 = arith.constant 0.000000e+00 : f32
    %153 = vector.broadcast %cst_71 : f32 to vector<8x64xf32>
    %154 = arith.maximumf %152, %153 : vector<8x64xf32>
    %cst_72 = arith.constant dense<0.000000e+00> : vector<8x32xf32>
    %155 = tpu.matmul %154, %149, %cst_72 {dimension_numbers = #tpu.dot_dimension_numbers<[1], [0], [0], [1], [0, 0, 1, 1], [], []>} : vector<8x64xf32>, vector<64x32xf32>, vector<8x32xf32> -> vector<8x32xf32>
    %156 = arith.addf %146, %155 : vector<8x32xf32>
    %157 = arith.addf %121, %156 : vector<8x32xf32>
    %c0_73 = arith.constant 0 : index
    %c0_74 = arith.constant 0 : index
    %158 = vector.load %arg12[%c0_73, %c0_74] : memref<1x32xf32, #tpu.memory_space<vmem>>, vector<1x32xf32>
    %159 = vector.broadcast %158 : vector<1x32xf32> to vector<8x32xf32>
    %160 = arith.addf %157, %159 : vector<8x32xf32>
    %c0_75 = arith.constant 0 : index
    %c0_76 = arith.constant 0 : index
    %c0_77 = arith.constant 0 : index
    %161 = vector.load %arg17[%c0_75, %c0_76, %c0_77] : memref<1x8x32xf32, #tpu.memory_space<vmem>>, vector<1x8x32xf32>
    %162 = vector.shape_cast %161 : vector<1x8x32xf32> to vector<8x32xf32>
    %163 = vector.shape_cast %160 : vector<8x32xf32> to vector<1x8x32xf32>
    tpu.vector_store %arg17[%c0_75, %c0_76, %c0_77], %163 {strides = array<i32>} : memref<1x8x32xf32, #tpu.memory_space<vmem>>, vector<1x8x32xf32>,
    return
  }
  func.func @transform_0(%arg0: i32, %arg1: i32) -> (i32, i32, i32) {
    %c0_i32 = arith.constant 0 : i32
    %c0_i32_0 = arith.constant 0 : i32
    return %arg0, %arg1, %c0_i32 : i32, i32, i32
  }
  func.func @transform_1(%arg0: i32, %arg1: i32) -> (i32, i32, i32) {
    %c0_i32 = arith.constant 0 : i32
    %c0_i32_0 = arith.constant 0 : i32
    %c0_i32_1 = arith.constant 0 : i32
    return %arg0, %c0_i32, %c0_i32_0 : i32, i32, i32
  }
  func.func @transform_2(%arg0: i32, %arg1: i32) -> (i32, i32) {
    %c0_i32 = arith.constant 0 : i32
    %c0_i32_0 = arith.constant 0 : i32
    %c0_i32_1 = arith.constant 0 : i32
    return %c0_i32, %c0_i32_0 : i32, i32
  }
  func.func @transform_3(%arg0: i32, %arg1: i32) -> (i32, i32) {
    %c0_i32 = arith.constant 0 : i32
    %c0_i32_0 = arith.constant 0 : i32
    %c0_i32_1 = arith.constant 0 : i32
    return %c0_i32, %c0_i32_0 : i32, i32
  }
  func.func @transform_4(%arg0: i32, %arg1: i32) -> (i32, i32) {
    %c0_i32 = arith.constant 0 : i32
    %c0_i32_0 = arith.constant 0 : i32
    %c0_i32_1 = arith.constant 0 : i32
    return %c0_i32, %c0_i32_0 : i32, i32
  }
  func.func @transform_5(%arg0: i32, %arg1: i32) -> (i32, i32) {
    %c0_i32 = arith.constant 0 : i32
    %c0_i32_0 = arith.constant 0 : i32
    %c0_i32_1 = arith.constant 0 : i32
    return %c0_i32, %c0_i32_0 : i32, i32
  }
  func.func @transform_6(%arg0: i32, %arg1: i32) -> (i32, i32) {
    %c0_i32 = arith.constant 0 : i32
    %c0_i32_0 = arith.constant 0 : i32
    %c0_i32_1 = arith.constant 0 : i32
    return %c0_i32, %c0_i32_0 : i32, i32
  }
  func.func @transform_7(%arg0: i32, %arg1: i32) -> (i32, i32) {
    %c0_i32 = arith.constant 0 : i32
    %c0_i32_0 = arith.constant 0 : i32
    %c0_i32_1 = arith.constant 0 : i32
    return %c0_i32, %c0_i32_0 : i32, i32
  }
  func.func @transform_8(%arg0: i32, %arg1: i32) -> (i32, i32) {
    %c0_i32 = arith.constant 0 : i32
    %c0_i32_0 = arith.constant 0 : i32
    %c0_i32_1 = arith.constant 0 : i32
    return %c0_i32, %c0_i32_0 : i32, i32
  }
  func.func @transform_9(%arg0: i32, %arg1: i32) -> (i32, i32) {
    %c0_i32 = arith.constant 0 : i32
    %c0_i32_0 = arith.constant 0 : i32
    %c0_i32_1 = arith.constant 0 : i32
    return %c0_i32, %c0_i32_0 : i32, i32
  }
  func.func @transform_10(%arg0: i32, %arg1: i32) -> (i32, i32) {
    %c0_i32 = arith.constant 0 : i32
    %c0_i32_0 = arith.constant 0 : i32
    %c0_i32_1 = arith.constant 0 : i32
    return %c0_i32, %c0_i32_0 : i32, i32
  }
  func.func @transform_11(%arg0: i32, %arg1: i32) -> (i32, i32) {
    %c0_i32 = arith.constant 0 : i32
    %c0_i32_0 = arith.constant 0 : i32
    %c0_i32_1 = arith.constant 0 : i32
    return %c0_i32, %c0_i32_0 : i32, i32
  }
  func.func @transform_12(%arg0: i32, %arg1: i32) -> (i32, i32) {
    %c0_i32 = arith.constant 0 : i32
    %c0_i32_0 = arith.constant 0 : i32
    %c0_i32_1 = arith.constant 0 : i32
    return %c0_i32, %c0_i32_0 : i32, i32
  }
  func.func @transform_13(%arg0: i32, %arg1: i32) -> (i32, i32) {
    %c0_i32 = arith.constant 0 : i32
    %c0_i32_0 = arith.constant 0 : i32
    %c0_i32_1 = arith.constant 0 : i32
    return %c0_i32, %c0_i32_0 : i32, i32
  }
  func.func @transform_14(%arg0: i32, %arg1: i32) -> (i32, i32) {
    %c0_i32 = arith.constant 0 : i32
    %c0_i32_0 = arith.constant 0 : i32
    %c0_i32_1 = arith.constant 0 : i32
    return %c0_i32, %c0_i32_0 : i32, i32
  }
  func.func @transform_15(%arg0: i32, %arg1: i32) -> (i32, i32, i32) {
    %c0_i32 = arith.constant 0 : i32
    %c0_i32_0 = arith.constant 0 : i32
    return %arg0, %arg1, %c0_i32 : i32, i32, i32
  }
}

module attributes {stable_mosaic.version = 11 : i64} {
  func.func @encoder_block_kernel(%arg0: i32, %arg1: i32, %arg2: memref<1x8x32xf32, #tpu.memory_space<vmem>>, %arg3: memref<1x8x32xf32, #tpu.memory_space<vmem>>, %arg4: memref<32x32xf32, #tpu.memory_space<vmem>>, %arg5: memref<32x32xf32, #tpu.memory_space<vmem>>, %arg6: memref<32x32xf32, #tpu.memory_space<vmem>>, %arg7: memref<32x32xf32, #tpu.memory_space<vmem>>, %arg8: memref<1x32xf32, #tpu.memory_space<vmem>>, %arg9: memref<32x64xf32, #tpu.memory_space<vmem>>, %arg10: memref<1x64xf32, #tpu.memory_space<vmem>>, %arg11: memref<64x32xf32, #tpu.memory_space<vmem>>, %arg12: memref<1x32xf32, #tpu.memory_space<vmem>>, %arg13: memref<1x32xf32, #tpu.memory_space<vmem>>, %arg14: memref<1x32xf32, #tpu.memory_space<vmem>>, %arg15: memref<1x32xf32, #tpu.memory_space<vmem>>, %arg16: memref<1x32xf32, #tpu.memory_space<vmem>>, %arg17: memref<1x8x32xf32, #tpu.memory_space<vmem>>, %arg18: memref<8x32xf32, #tpu.memory_space<vmem>>, %arg19: memref<8x32xf32, #tpu.memory_space<vmem>>) attributes {dimension_semantics = [#tpu.dimension_semantics<parallel>, #tpu.dimension_semantics<arbitrary>], iteration_bounds = array<i64: 2, 1>, scalar_prefetch = 0 : i64, scratch_operands = 2 : i64, tpu.core_type = #tpu.core_type<tc>, window_params = [{transform_indices = @transform_0, window_bounds = array<i64: 1, 8, 32>}, {transform_indices = @transform_1, window_bounds = array<i64: 1, 8, 32>}, {pipeline_mode = #tpu.pipeline_mode<synchronous>, transform_indices = @transform_2, window_bounds = array<i64: 32, 32>}, {pipeline_mode = #tpu.pipeline_mode<synchronous>, transform_indices = @transform_3, window_bounds = array<i64: 32, 32>}, {pipeline_mode = #tpu.pipeline_mode<synchronous>, transform_indices = @transform_4, window_bounds = array<i64: 32, 32>}, {pipeline_mode = #tpu.pipeline_mode<synchronous>, transform_indices = @transform_5, window_bounds = array<i64: 32, 32>}, {pipeline_mode = #tpu.pipeline_mode<synchronous>, transform_indices = @transform_6, window_bounds = array<i64: 1, 32>}, {pipeline_mode = #tpu.pipeline_mode<synchronous>, transform_indices = @transform_7, window_bounds = array<i64: 32, 64>}, {pipeline_mode = #tpu.pipeline_mode<synchronous>, transform_indices = @transform_8, window_bounds = array<i64: 1, 64>}, {pipeline_mode = #tpu.pipeline_mode<synchronous>, transform_indices = @transform_9, window_bounds = array<i64: 64, 32>}, {pipeline_mode = #tpu.pipeline_mode<synchronous>, transform_indices = @transform_10, window_bounds = array<i64: 1, 32>}, {pipeline_mode = #tpu.pipeline_mode<synchronous>, transform_indices = @transform_11, window_bounds = array<i64: 1, 32>}, {pipeline_mode = #tpu.pipeline_mode<synchronous>, transform_indices = @transform_12, window_bounds = array<i64: 1, 32>}, {pipeline_mode = #tpu.pipeline_mode<synchronous>, transform_indices = @transform_13, window_bounds = array<i64: 1, 32>}, {pipeline_mode = #tpu.pipeline_mode<synchronous>, transform_indices = @transform_14, window_bounds = array<i64: 1, 32>}, {transform_indices = @transform_15, window_bounds = array<i64: 1, 8, 32>}]} {
    %c0 = arith.constant 0 : index
    %c0_0 = arith.constant 0 : index
    %0 = vector.load %arg13[%c0, %c0_0] : memref<1x32xf32, #tpu.memory_space<vmem>>, vector<1x32xf32>
    %c0_1 = arith.constant 0 : index
    %c0_2 = arith.constant 0 : index
    %1 = vector.load %arg14[%c0_1, %c0_2] : memref<1x32xf32, #tpu.memory_space<vmem>>, vector<1x32xf32>
    %c0_i32 = arith.constant 0 : i32
    %2 = arith.cmpi eq, %arg1, %c0_i32 : i32
    %3 = arith.extui %2 : i1 to i32
    %c0_i32_3 = arith.constant 0 : i32
    %4 = arith.cmpi ne, %3, %c0_i32_3 : i32
    scf.if %4 {
      %c0_78 = arith.constant 0 : index
      %c0_79 = arith.constant 0 : index
      %c0_80 = arith.constant 0 : index
      %164 = vector.load %arg3[%c0_78, %c0_79, %c0_80] : memref<1x8x32xf32, #tpu.memory_space<vmem>>, vector<1x8x32xf32>
      %165 = vector.shape_cast %164 : vector<1x8x32xf32> to vector<8x32xf32>
      %cst_81 = arith.constant dense<0.000000e+00> : vector<8xf32>
      %166 = vector.multi_reduction <add>, %165, %cst_81 [1] : vector<8x32xf32> to vector<8xf32>
      %167 = vector.shape_cast %166 : vector<8xf32> to vector<8x1xf32>
      %cst_82 = arith.constant 3.200000e+01 : f32
      %168 = vector.broadcast %cst_82 : f32 to vector<8x1xf32>
      %169 = arith.divf %167, %168 : vector<8x1xf32>
      %170 = vector.broadcast %169 : vector<8x1xf32> to vector<8x32xf32>
      %171 = arith.subf %165, %170 : vector<8x32xf32>
      %172 = arith.mulf %171, %171 : vector<8x32xf32>
      %cst_83 = arith.constant dense<0.000000e+00> : vector<8xf32>
      %173 = vector.multi_reduction <add>, %172, %cst_83 [1] : vector<8x32xf32> to vector<8xf32>
      %174 = vector.shape_cast %173 : vector<8xf32> to vector<8x1xf32>
      %cst_84 = arith.constant 3.200000e+01 : f32
      %175 = vector.broadcast %cst_84 : f32 to vector<8x1xf32>
      %176 = arith.divf %174, %175 : vector<8x1xf32>
      %177 = vector.broadcast %169 : vector<8x1xf32> to vector<8x32xf32>
      %178 = arith.subf %165, %177 : vector<8x32xf32>
      %cst_85 = arith.constant 9.99999974E-6 : f32
      %179 = vector.broadcast %cst_85 : f32 to vector<8x1xf32>
      %180 = arith.addf %176, %179 : vector<8x1xf32>
      %181 = math.rsqrt %180 : vector<8x1xf32>
      %182 = vector.broadcast %181 : vector<8x1xf32> to vector<8x32xf32>
      %183 = arith.mulf %178, %182 : vector<8x32xf32>
      %184 = vector.broadcast %0 : vector<1x32xf32> to vector<8x32xf32>
      %185 = arith.mulf %183, %184 : vector<8x32xf32>
      %186 = vector.broadcast %1 : vector<1x32xf32> to vector<8x32xf32>
      %187 = arith.addf %185, %186 : vector<8x32xf32>
      %c0_86 = arith.constant 0 : index
      %c0_87 = arith.constant 0 : index
      %188 = vector.load %arg5[%c0_86, %c0_87] : memref<32x32xf32, #tpu.memory_space<vmem>>, vector<32x32xf32>
      %cst_88 = arith.constant dense<0.000000e+00> : vector<8x32xf32>
      %189 = tpu.matmul %187, %188, %cst_88 {dimension_numbers = #tpu.dot_dimension_numbers<[1], [0], [0], [1], [0, 0, 1, 1], [], []>} : vector<8x32xf32>, vector<32x32xf32>, vector<8x32xf32> -> vector<8x32xf32>
      %c0_89 = arith.constant 0 : index
      %c0_90 = arith.constant 0 : index
      %190 = vector.load %arg18[%c0_89, %c0_90] : memref<8x32xf32, #tpu.memory_space<vmem>>, vector<8x32xf32>
      tpu.vector_store %arg18[%c0_89, %c0_90], %189 {strides = array<i32>} : memref<8x32xf32, #tpu.memory_space<vmem>>, vector<8x32xf32>,
      %c0_91 = arith.constant 0 : index
      %c0_92 = arith.constant 0 : index
      %191 = vector.load %arg6[%c0_91, %c0_92] : memref<32x32xf32, #tpu.memory_space<vmem>>, vector<32x32xf32>
      %cst_93 = arith.constant dense<0.000000e+00> : vector<8x32xf32>
      %192 = tpu.matmul %187, %191, %cst_93 {dimension_numbers = #tpu.dot_dimension_numbers<[1], [0], [0], [1], [0, 0, 1, 1], [], []>} : vector<8x32xf32>, vector<32x32xf32>, vector<8x32xf32> -> vector<8x32xf32>
      %c0_94 = arith.constant 0 : index
      %c0_95 = arith.constant 0 : index
      %193 = vector.load %arg19[%c0_94, %c0_95] : memref<8x32xf32, #tpu.memory_space<vmem>>, vector<8x32xf32>
      tpu.vector_store %arg19[%c0_94, %c0_95], %192 {strides = array<i32>} : memref<8x32xf32, #tpu.memory_space<vmem>>, vector<8x32xf32>,
    } else {
    }
    %c0_4 = arith.constant 0 : index
    %c0_5 = arith.constant 0 : index
    %c0_6 = arith.constant 0 : index
    %5 = vector.load %arg2[%c0_4, %c0_5, %c0_6] : memref<1x8x32xf32, #tpu.memory_space<vmem>>, vector<1x8x32xf32>
    %6 = vector.shape_cast %5 : vector<1x8x32xf32> to vector<8x32xf32>
    %cst = arith.constant dense<0.000000e+00> : vector<8xf32>
    %7 = vector.multi_reduction <add>, %6, %cst [1] : vector<8x32xf32> to vector<8xf32>
    %8 = vector.shape_cast %7 : vector<8xf32> to vector<8x1xf32>
    %cst_7 = arith.constant 3.200000e+01 : f32
    %9 = vector.broadcast %cst_7 : f32 to vector<8x1xf32>
    %10 = arith.divf %8, %9 : vector<8x1xf32>
    %11 = vector.broadcast %10 : vector<8x1xf32> to vector<8x32xf32>
    %12 = arith.subf %6, %11 : vector<8x32xf32>
    %13 = arith.mulf %12, %12 : vector<8x32xf32>
    %cst_8 = arith.constant dense<0.000000e+00> : vector<8xf32>
    %14 = vector.multi_reduction <add>, %13, %cst_8 [1] : vector<8x32xf32> to vector<8xf32>
    %15 = vector.shape_cast %14 : vector<8xf32> to vector<8x1xf32>
    %cst_9 = arith.constant 3.200000e+01 : f32
    %16 = vector.broadcast %cst_9 : f32 to vector<8x1xf32>
    %17 = arith.divf %15, %16 : vector<8x1xf32>
    %18 = vector.broadcast %10 : vector<8x1xf32> to vector<8x32xf32>
    %19 = arith.subf %6, %18 : vector<8x32xf32>
    %cst_10 = arith.constant 9.99999974E-6 : f32
    %20 = vector.broadcast %cst_10 : f32 to vector<8x1xf32>
    %21 = arith.addf %17, %20 : vector<8x1xf32>
    %22 = math.rsqrt %21 : vector<8x1xf32>
    %23 = vector.broadcast %22 : vector<8x1xf32> to vector<8x32xf32>
    %24 = arith.mulf %19, %23 : vector<8x32xf32>
    %25 = vector.broadcast %0 : vector<1x32xf32> to vector<8x32xf32>
    %26 = arith.mulf %24, %25 : vector<8x32xf32>
    %27 = vector.broadcast %1 : vector<1x32xf32> to vector<8x32xf32>
    %28 = arith.addf %26, %27 : vector<8x32xf32>
    %c0_11 = arith.constant 0 : index
    %c0_12 = arith.constant 0 : index
    %29 = vector.load %arg4[%c0_11, %c0_12] : memref<32x32xf32, #tpu.memory_space<vmem>>, vector<32x32xf32>
    %cst_13 = arith.constant dense<0.000000e+00> : vector<8x32xf32>
    %30 = tpu.matmul %28, %29, %cst_13 {dimension_numbers = #tpu.dot_dimension_numbers<[1], [0], [0], [1], [0, 0, 1, 1], [], []>} : vector<8x32xf32>, vector<32x32xf32>, vector<8x32xf32> -> vector<8x32xf32>
    %c0_14 = arith.constant 0 : index
    %c0_15 = arith.constant 0 : index
    %31 = vector.load %arg18[%c0_14, %c0_15] : memref<8x32xf32, #tpu.memory_space<vmem>>, vector<8x32xf32>
    %c0_16 = arith.constant 0 : index
    %c0_17 = arith.constant 0 : index
    %32 = vector.load %arg19[%c0_16, %c0_17] : memref<8x32xf32, #tpu.memory_space<vmem>>, vector<8x32xf32>
    %cst_18 = arith.constant 0.000000e+00 : f32
    %33 = vector.broadcast %cst_18 : f32 to vector<8x32xf32>
    %34 = vector.extract_strided_slice %30 {offsets = [0, 0], sizes = [8, 8], strides = [1, 1]} : vector<8x32xf32> to vector<8x8xf32>
    %35 = vector.extract_strided_slice %31 {offsets = [0, 0], sizes = [8, 8], strides = [1, 1]} : vector<8x32xf32> to vector<8x8xf32>
    %cst_19 = arith.constant dense<0.000000e+00> : vector<8x8xf32>
    %36 = tpu.matmul %34, %35, %cst_19 {dimension_numbers = #tpu.dot_dimension_numbers<[1], [1], [0], [0], [0, 0, 1, 0], [], []>} : vector<8x8xf32>, vector<8x8xf32>, vector<8x8xf32> -> vector<8x8xf32>
    %cst_20 = arith.constant 0.353553385 : f32
    %37 = vector.broadcast %cst_20 : f32 to vector<8x8xf32>
    %38 = arith.mulf %36, %37 : vector<8x8xf32>
    %cst_21 = arith.constant dense<0xFF800000> : vector<8xf32>
    %39 = vector.multi_reduction <maximumf>, %38, %cst_21 [1] : vector<8x8xf32> to vector<8xf32>
    %40 = vector.shape_cast %39 : vector<8xf32> to vector<8x1xf32>
    %41 = vector.broadcast %40 : vector<8x1xf32> to vector<8x8xf32>
    %42 = arith.subf %38, %41 : vector<8x8xf32>
    %43 = math.exp %42 : vector<8x8xf32>
    %cst_22 = arith.constant dense<0.000000e+00> : vector<8xf32>
    %44 = vector.multi_reduction <add>, %43, %cst_22 [1] : vector<8x8xf32> to vector<8xf32>
    %45 = vector.shape_cast %44 : vector<8xf32> to vector<8x1xf32>
    %cst_23 = arith.constant 1.000000e+00 : f32
    %46 = vector.broadcast %cst_23 : f32 to vector<8x1xf32>
    %47 = arith.divf %46, %45 : vector<8x1xf32>
    %48 = vector.broadcast %47 : vector<8x1xf32> to vector<8x8xf32>
    %49 = arith.mulf %43, %48 : vector<8x8xf32>
    %50 = vector.extract_strided_slice %32 {offsets = [0, 0], sizes = [8, 8], strides = [1, 1]} : vector<8x32xf32> to vector<8x8xf32>
    %cst_24 = arith.constant dense<0.000000e+00> : vector<8x8xf32>
    %51 = tpu.matmul %49, %50, %cst_24 {dimension_numbers = #tpu.dot_dimension_numbers<[1], [0], [0], [1], [0, 0, 1, 1], [], []>} : vector<8x8xf32>, vector<8x8xf32>, vector<8x8xf32> -> vector<8x8xf32>
    %c0_25 = arith.constant 0 : index
    %c0_26 = arith.constant 0 : index
    %52 = vector.load %arg7[%c0_25, %c0_26] : memref<32x32xf32, #tpu.memory_space<vmem>>, vector<8x32xf32>
    %cst_27 = arith.constant dense<0.000000e+00> : vector<8x32xf32>
    %53 = tpu.matmul %51, %52, %cst_27 {dimension_numbers = #tpu.dot_dimension_numbers<[1], [0], [0], [1], [0, 0, 1, 1], [], []>} : vector<8x8xf32>, vector<8x32xf32>, vector<8x32xf32> -> vector<8x32xf32>
    %54 = arith.addf %33, %53 : vector<8x32xf32>
    %55 = vector.extract_strided_slice %30 {offsets = [0, 8], sizes = [8, 8], strides = [1, 1]} : vector<8x32xf32> to vector<8x8xf32>
    %56 = vector.extract_strided_slice %31 {offsets = [0, 8], sizes = [8, 8], strides = [1, 1]} : vector<8x32xf32> to vector<8x8xf32>
    %cst_28 = arith.constant dense<0.000000e+00> : vector<8x8xf32>
    %57 = tpu.matmul %55, %56, %cst_28 {dimension_numbers = #tpu.dot_dimension_numbers<[1], [1], [0], [0], [0, 0, 1, 0], [], []>} : vector<8x8xf32>, vector<8x8xf32>, vector<8x8xf32> -> vector<8x8xf32>
    %cst_29 = arith.constant 0.353553385 : f32
    %58 = vector.broadcast %cst_29 : f32 to vector<8x8xf32>
    %59 = arith.mulf %57, %58 : vector<8x8xf32>
    %cst_30 = arith.constant dense<0xFF800000> : vector<8xf32>
    %60 = vector.multi_reduction <maximumf>, %59, %cst_30 [1] : vector<8x8xf32> to vector<8xf32>
    %61 = vector.shape_cast %60 : vector<8xf32> to vector<8x1xf32>
    %62 = vector.broadcast %61 : vector<8x1xf32> to vector<8x8xf32>
    %63 = arith.subf %59, %62 : vector<8x8xf32>
    %64 = math.exp %63 : vector<8x8xf32>
    %cst_31 = arith.constant dense<0.000000e+00> : vector<8xf32>
    %65 = vector.multi_reduction <add>, %64, %cst_31 [1] : vector<8x8xf32> to vector<8xf32>
    %66 = vector.shape_cast %65 : vector<8xf32> to vector<8x1xf32>
    %cst_32 = arith.constant 1.000000e+00 : f32
    %67 = vector.broadcast %cst_32 : f32 to vector<8x1xf32>
    %68 = arith.divf %67, %66 : vector<8x1xf32>
    %69 = vector.broadcast %68 : vector<8x1xf32> to vector<8x8xf32>
    %70 = arith.mulf %64, %69 : vector<8x8xf32>
    %71 = vector.extract_strided_slice %32 {offsets = [0, 8], sizes = [8, 8], strides = [1, 1]} : vector<8x32xf32> to vector<8x8xf32>
    %cst_33 = arith.constant dense<0.000000e+00> : vector<8x8xf32>
    %72 = tpu.matmul %70, %71, %cst_33 {dimension_numbers = #tpu.dot_dimension_numbers<[1], [0], [0], [1], [0, 0, 1, 1], [], []>} : vector<8x8xf32>, vector<8x8xf32>, vector<8x8xf32> -> vector<8x8xf32>
    %c8 = arith.constant 8 : index
    %c0_34 = arith.constant 0 : index
    %73 = vector.load %arg7[%c8, %c0_34] : memref<32x32xf32, #tpu.memory_space<vmem>>, vector<8x32xf32>
    %cst_35 = arith.constant dense<0.000000e+00> : vector<8x32xf32>
    %74 = tpu.matmul %72, %73, %cst_35 {dimension_numbers = #tpu.dot_dimension_numbers<[1], [0], [0], [1], [0, 0, 1, 1], [], []>} : vector<8x8xf32>, vector<8x32xf32>, vector<8x32xf32> -> vector<8x32xf32>
    %75 = arith.addf %54, %74 : vector<8x32xf32>
    %76 = vector.extract_strided_slice %30 {offsets = [0, 16], sizes = [8, 8], strides = [1, 1]} : vector<8x32xf32> to vector<8x8xf32>
    %77 = vector.extract_strided_slice %31 {offsets = [0, 16], sizes = [8, 8], strides = [1, 1]} : vector<8x32xf32> to vector<8x8xf32>
    %cst_36 = arith.constant dense<0.000000e+00> : vector<8x8xf32>
    %78 = tpu.matmul %76, %77, %cst_36 {dimension_numbers = #tpu.dot_dimension_numbers<[1], [1], [0], [0], [0, 0, 1, 0], [], []>} : vector<8x8xf32>, vector<8x8xf32>, vector<8x8xf32> -> vector<8x8xf32>
    %cst_37 = arith.constant 0.353553385 : f32
    %79 = vector.broadcast %cst_37 : f32 to vector<8x8xf32>
    %80 = arith.mulf %78, %79 : vector<8x8xf32>
    %cst_38 = arith.constant dense<0xFF800000> : vector<8xf32>
    %81 = vector.multi_reduction <maximumf>, %80, %cst_38 [1] : vector<8x8xf32> to vector<8xf32>
    %82 = vector.shape_cast %81 : vector<8xf32> to vector<8x1xf32>
    %83 = vector.broadcast %82 : vector<8x1xf32> to vector<8x8xf32>
    %84 = arith.subf %80, %83 : vector<8x8xf32>
    %85 = math.exp %84 : vector<8x8xf32>
    %cst_39 = arith.constant dense<0.000000e+00> : vector<8xf32>
    %86 = vector.multi_reduction <add>, %85, %cst_39 [1] : vector<8x8xf32> to vector<8xf32>
    %87 = vector.shape_cast %86 : vector<8xf32> to vector<8x1xf32>
    %cst_40 = arith.constant 1.000000e+00 : f32
    %88 = vector.broadcast %cst_40 : f32 to vector<8x1xf32>
    %89 = arith.divf %88, %87 : vector<8x1xf32>
    %90 = vector.broadcast %89 : vector<8x1xf32> to vector<8x8xf32>
    %91 = arith.mulf %85, %90 : vector<8x8xf32>
    %92 = vector.extract_strided_slice %32 {offsets = [0, 16], sizes = [8, 8], strides = [1, 1]} : vector<8x32xf32> to vector<8x8xf32>
    %cst_41 = arith.constant dense<0.000000e+00> : vector<8x8xf32>
    %93 = tpu.matmul %91, %92, %cst_41 {dimension_numbers = #tpu.dot_dimension_numbers<[1], [0], [0], [1], [0, 0, 1, 1], [], []>} : vector<8x8xf32>, vector<8x8xf32>, vector<8x8xf32> -> vector<8x8xf32>
    %c16 = arith.constant 16 : index
    %c0_42 = arith.constant 0 : index
    %94 = vector.load %arg7[%c16, %c0_42] : memref<32x32xf32, #tpu.memory_space<vmem>>, vector<8x32xf32>
    %cst_43 = arith.constant dense<0.000000e+00> : vector<8x32xf32>
    %95 = tpu.matmul %93, %94, %cst_43 {dimension_numbers = #tpu.dot_dimension_numbers<[1], [0], [0], [1], [0, 0, 1, 1], [], []>} : vector<8x8xf32>, vector<8x32xf32>, vector<8x32xf32> -> vector<8x32xf32>
    %96 = arith.addf %75, %95 : vector<8x32xf32>
    %97 = vector.extract_strided_slice %30 {offsets = [0, 24], sizes = [8, 8], strides = [1, 1]} : vector<8x32xf32> to vector<8x8xf32>
    %98 = vector.extract_strided_slice %31 {offsets = [0, 24], sizes = [8, 8], strides = [1, 1]} : vector<8x32xf32> to vector<8x8xf32>
    %cst_44 = arith.constant dense<0.000000e+00> : vector<8x8xf32>
    %99 = tpu.matmul %97, %98, %cst_44 {dimension_numbers = #tpu.dot_dimension_numbers<[1], [1], [0], [0], [0, 0, 1, 0], [], []>} : vector<8x8xf32>, vector<8x8xf32>, vector<8x8xf32> -> vector<8x8xf32>
    %cst_45 = arith.constant 0.353553385 : f32
    %100 = vector.broadcast %cst_45 : f32 to vector<8x8xf32>
    %101 = arith.mulf %99, %100 : vector<8x8xf32>
    %cst_46 = arith.constant dense<0xFF800000> : vector<8xf32>
    %102 = vector.multi_reduction <maximumf>, %101, %cst_46 [1] : vector<8x8xf32> to vector<8xf32>
    %103 = vector.shape_cast %102 : vector<8xf32> to vector<8x1xf32>
    %104 = vector.broadcast %103 : vector<8x1xf32> to vector<8x8xf32>
    %105 = arith.subf %101, %104 : vector<8x8xf32>
    %106 = math.exp %105 : vector<8x8xf32>
    %cst_47 = arith.constant dense<0.000000e+00> : vector<8xf32>
    %107 = vector.multi_reduction <add>, %106, %cst_47 [1] : vector<8x8xf32> to vector<8xf32>
    %108 = vector.shape_cast %107 : vector<8xf32> to vector<8x1xf32>
    %cst_48 = arith.constant 1.000000e+00 : f32
    %109 = vector.broadcast %cst_48 : f32 to vector<8x1xf32>
    %110 = arith.divf %109, %108 : vector<8x1xf32>
    %111 = vector.broadcast %110 : vector<8x1xf32> to vector<8x8xf32>
    %112 = arith.mulf %106, %111 : vector<8x8xf32>
    %113 = vector.extract_strided_slice %32 {offsets = [0, 24], sizes = [8, 8], strides = [1, 1]} : vector<8x32xf32> to vector<8x8xf32>
    %cst_49 = arith.constant dense<0.000000e+00> : vector<8x8xf32>
    %114 = tpu.matmul %112, %113, %cst_49 {dimension_numbers = #tpu.dot_dimension_numbers<[1], [0], [0], [1], [0, 0, 1, 1], [], []>} : vector<8x8xf32>, vector<8x8xf32>, vector<8x8xf32> -> vector<8x8xf32>
    %c24 = arith.constant 24 : index
    %c0_50 = arith.constant 0 : index
    %115 = vector.load %arg7[%c24, %c0_50] : memref<32x32xf32, #tpu.memory_space<vmem>>, vector<8x32xf32>
    %cst_51 = arith.constant dense<0.000000e+00> : vector<8x32xf32>
    %116 = tpu.matmul %114, %115, %cst_51 {dimension_numbers = #tpu.dot_dimension_numbers<[1], [0], [0], [1], [0, 0, 1, 1], [], []>} : vector<8x8xf32>, vector<8x32xf32>, vector<8x32xf32> -> vector<8x32xf32>
    %117 = arith.addf %96, %116 : vector<8x32xf32>
    %118 = arith.addf %6, %117 : vector<8x32xf32>
    %c0_52 = arith.constant 0 : index
    %c0_53 = arith.constant 0 : index
    %119 = vector.load %arg8[%c0_52, %c0_53] : memref<1x32xf32, #tpu.memory_space<vmem>>, vector<1x32xf32>
    %120 = vector.broadcast %119 : vector<1x32xf32> to vector<8x32xf32>
    %121 = arith.addf %118, %120 : vector<8x32xf32>
    %c0_54 = arith.constant 0 : index
    %c0_55 = arith.constant 0 : index
    %122 = vector.load %arg15[%c0_54, %c0_55] : memref<1x32xf32, #tpu.memory_space<vmem>>, vector<1x32xf32>
    %c0_56 = arith.constant 0 : index
    %c0_57 = arith.constant 0 : index
    %123 = vector.load %arg16[%c0_56, %c0_57] : memref<1x32xf32, #tpu.memory_space<vmem>>, vector<1x32xf32>
    %cst_58 = arith.constant dense<0.000000e+00> : vector<8xf32>
    %124 = vector.multi_reduction <add>, %121, %cst_58 [1] : vector<8x32xf32> to vector<8xf32>
    %125 = vector.shape_cast %124 : vector<8xf32> to vector<8x1xf32>
    %cst_59 = arith.constant 3.200000e+01 : f32
    %126 = vector.broadcast %cst_59 : f32 to vector<8x1xf32>
    %127 = arith.divf %125, %126 : vector<8x1xf32>
    %128 = vector.broadcast %127 : vector<8x1xf32> to vector<8x32xf32>
    %129 = arith.subf %121, %128 : vector<8x32xf32>
    %130 = arith.mulf %129, %129 : vector<8x32xf32>
    %cst_60 = arith.constant dense<0.000000e+00> : vector<8xf32>
    %131 = vector.multi_reduction <add>, %130, %cst_60 [1] : vector<8x32xf32> to vector<8xf32>
    %132 = vector.shape_cast %131 : vector<8xf32> to vector<8x1xf32>
    %cst_61 = arith.constant 3.200000e+01 : f32
    %133 = vector.broadcast %cst_61 : f32 to vector<8x1xf32>
    %134 = arith.divf %132, %133 : vector<8x1xf32>
    %135 = vector.broadcast %127 : vector<8x1xf32> to vector<8x32xf32>
    %136 = arith.subf %121, %135 : vector<8x32xf32>
    %cst_62 = arith.constant 9.99999974E-6 : f32
    %137 = vector.broadcast %cst_62 : f32 to vector<8x1xf32>
    %138 = arith.addf %134, %137 : vector<8x1xf32>
    %139 = math.rsqrt %138 : vector<8x1xf32>
    %140 = vector.broadcast %139 : vector<8x1xf32> to vector<8x32xf32>
    %141 = arith.mulf %136, %140 : vector<8x32xf32>
    %142 = vector.broadcast %122 : vector<1x32xf32> to vector<8x32xf32>
    %143 = arith.mulf %141, %142 : vector<8x32xf32>
    %144 = vector.broadcast %123 : vector<1x32xf32> to vector<8x32xf32>
    %145 = arith.addf %143, %144 : vector<8x32xf32>
    %cst_63 = arith.constant 0.000000e+00 : f32
    %146 = vector.broadcast %cst_63 : f32 to vector<8x32xf32>
    %c0_64 = arith.constant 0 : index
    %c0_65 = arith.constant 0 : index
    %147 = vector.load %arg9[%c0_64, %c0_65] : memref<32x64xf32, #tpu.memory_space<vmem>>, vector<32x64xf32>
    %c0_66 = arith.constant 0 : index
    %c0_67 = arith.constant 0 : index
    %148 = vector.load %arg10[%c0_66, %c0_67] : memref<1x64xf32, #tpu.memory_space<vmem>>, vector<1x64xf32>
    %c0_68 = arith.constant 0 : index
    %c0_69 = arith.constant 0 : index
    %149 = vector.load %arg11[%c0_68, %c0_69] : memref<64x32xf32, #tpu.memory_space<vmem>>, vector<64x32xf32>
    %cst_70 = arith.constant dense<0.000000e+00> : vector<8x64xf32>
    %150 = tpu.matmul %145, %147, %cst_70 {dimension_numbers = #tpu.dot_dimension_numbers<[1], [0], [0], [1], [0, 0, 1, 1], [], []>} : vector<8x32xf32>, vector<32x64xf32>, vector<8x64xf32> -> vector<8x64xf32>
    %151 = vector.broadcast %148 : vector<1x64xf32> to vector<8x64xf32>
    %152 = arith.addf %150, %151 : vector<8x64xf32>
    %cst_71 = arith.constant 0.000000e+00 : f32
    %153 = vector.broadcast %cst_71 : f32 to vector<8x64xf32>
    %154 = arith.maximumf %152, %153 : vector<8x64xf32>
    %cst_72 = arith.constant dense<0.000000e+00> : vector<8x32xf32>
    %155 = tpu.matmul %154, %149, %cst_72 {dimension_numbers = #tpu.dot_dimension_numbers<[1], [0], [0], [1], [0, 0, 1, 1], [], []>} : vector<8x64xf32>, vector<64x32xf32>, vector<8x32xf32> -> vector<8x32xf32>
    %156 = arith.addf %146, %155 : vector<8x32xf32>
    %157 = arith.addf %121, %156 : vector<8x32xf32>
    %c0_73 = arith.constant 0 : index
    %c0_74 = arith.constant 0 : index
    %158 = vector.load %arg12[%c0_73, %c0_74] : memref<1x32xf32, #tpu.memory_space<vmem>>, vector<1x32xf32>
    %159 = vector.broadcast %158 : vector<1x32xf32> to vector<8x32xf32>
    %160 = arith.addf %157, %159 : vector<8x32xf32>
    %c0_75 = arith.constant 0 : index
    %c0_76 = arith.constant 0 : index
    %c0_77 = arith.constant 0 : index
    %161 = vector.load %arg17[%c0_75, %c0_76, %c0_77] : memref<1x8x32xf32, #tpu.memory_space<vmem>>, vector<1x8x32xf32>
    %162 = vector.shape_cast %161 : vector<1x8x32xf32> to vector<8x32xf32>
    %163 = vector.shape_cast %160 : vector<8x32xf32> to vector<1x8x32xf32>
    tpu.vector_store %arg17[%c0_75, %c0_76, %c0_77], %163 {strides = array<i32>} : memref<1x8x32xf32, #tpu.memory_space<vmem>>, vector<1x8x32xf32>,
    return
  }
  func.func @transform_0(%arg0: i32, %arg1: i32) -> (i32, i32, i32) {
    %c0_i32 = arith.constant 0 : i32
    %c0_i32_0 = arith.constant 0 : i32
    return %arg0, %arg1, %c0_i32 : i32, i32, i32
  }
  func.func @transform_1(%arg0: i32, %arg1: i32) -> (i32, i32, i32) {
    %c0_i32 = arith.constant 0 : i32
    %c0_i32_0 = arith.constant 0 : i32
    %c0_i32_1 = arith.constant 0 : i32
    return %arg0, %c0_i32, %c0_i32_0 : i32, i32, i32
  }
  func.func @transform_2(%arg0: i32, %arg1: i32) -> (i32, i32) {
    %c0_i32 = arith.constant 0 : i32
    %c0_i32_0 = arith.constant 0 : i32
    %c0_i32_1 = arith.constant 0 : i32
    return %c0_i32, %c0_i32_0 : i32, i32
  }
  func.func @transform_3(%arg0: i32, %arg1: i32) -> (i32, i32) {
    %c0_i32 = arith.constant 0 : i32
    %c0_i32_0 = arith.constant 0 : i32
    %c0_i32_1 = arith.constant 0 : i32
    return %c0_i32, %c0_i32_0 : i32, i32
  }
  func.func @transform_4(%arg0: i32, %arg1: i32) -> (i32, i32) {
    %c0_i32 = arith.constant 0 : i32
    %c0_i32_0 = arith.constant 0 : i32
    %c0_i32_1 = arith.constant 0 : i32
    return %c0_i32, %c0_i32_0 : i32, i32
  }
  func.func @transform_5(%arg0: i32, %arg1: i32) -> (i32, i32) {
    %c0_i32 = arith.constant 0 : i32
    %c0_i32_0 = arith.constant 0 : i32
    %c0_i32_1 = arith.constant 0 : i32
    return %c0_i32, %c0_i32_0 : i32, i32
  }
  func.func @transform_6(%arg0: i32, %arg1: i32) -> (i32, i32) {
    %c0_i32 = arith.constant 0 : i32
    %c0_i32_0 = arith.constant 0 : i32
    %c0_i32_1 = arith.constant 0 : i32
    return %c0_i32, %c0_i32_0 : i32, i32
  }
  func.func @transform_7(%arg0: i32, %arg1: i32) -> (i32, i32) {
    %c0_i32 = arith.constant 0 : i32
    %c0_i32_0 = arith.constant 0 : i32
    %c0_i32_1 = arith.constant 0 : i32
    return %c0_i32, %c0_i32_0 : i32, i32
  }
  func.func @transform_8(%arg0: i32, %arg1: i32) -> (i32, i32) {
    %c0_i32 = arith.constant 0 : i32
    %c0_i32_0 = arith.constant 0 : i32
    %c0_i32_1 = arith.constant 0 : i32
    return %c0_i32, %c0_i32_0 : i32, i32
  }
  func.func @transform_9(%arg0: i32, %arg1: i32) -> (i32, i32) {
    %c0_i32 = arith.constant 0 : i32
    %c0_i32_0 = arith.constant 0 : i32
    %c0_i32_1 = arith.constant 0 : i32
    return %c0_i32, %c0_i32_0 : i32, i32
  }
  func.func @transform_10(%arg0: i32, %arg1: i32) -> (i32, i32) {
    %c0_i32 = arith.constant 0 : i32
    %c0_i32_0 = arith.constant 0 : i32
    %c0_i32_1 = arith.constant 0 : i32
    return %c0_i32, %c0_i32_0 : i32, i32
  }
  func.func @transform_11(%arg0: i32, %arg1: i32) -> (i32, i32) {
    %c0_i32 = arith.constant 0 : i32
    %c0_i32_0 = arith.constant 0 : i32
    %c0_i32_1 = arith.constant 0 : i32
    return %c0_i32, %c0_i32_0 : i32, i32
  }
  func.func @transform_12(%arg0: i32, %arg1: i32) -> (i32, i32) {
    %c0_i32 = arith.constant 0 : i32
    %c0_i32_0 = arith.constant 0 : i32
    %c0_i32_1 = arith.constant 0 : i32
    return %c0_i32, %c0_i32_0 : i32, i32
  }
  func.func @transform_13(%arg0: i32, %arg1: i32) -> (i32, i32) {
    %c0_i32 = arith.constant 0 : i32
    %c0_i32_0 = arith.constant 0 : i32
    %c0_i32_1 = arith.constant 0 : i32
    return %c0_i32, %c0_i32_0 : i32, i32
  }
  func.func @transform_14(%arg0: i32, %arg1: i32) -> (i32, i32) {
    %c0_i32 = arith.constant 0 : i32
    %c0_i32_0 = arith.constant 0 : i32
    %c0_i32_1 = arith.constant 0 : i32
    return %c0_i32, %c0_i32_0 : i32, i32
  }
  func.func @transform_15(%arg0: i32, %arg1: i32) -> (i32, i32, i32) {
    %c0_i32 = arith.constant 0 : i32
    %c0_i32_0 = arith.constant 0 : i32
    return %arg0, %arg1, %c0_i32 : i32, i32, i32
  }
}

</mosaic_0001>

<bundles_post_ra>
// kernel: tpu_custom_call.1
= control target key start
LH: loop header
LB: loop body
LE: loop exit
PB: predicated region body
PF: predicated region fallthrough
CT: control target
= control target key end

     0   :  { %s3265_s0 = inlined_call_operand.hbm [shape: f32[2,8,32], index: 0, kind: input, shape index: {}]   ;;  %s3266_s1 = inlined_call_operand.hbm [shape: f32[2,8,32], index: 1, kind: input, shape index: {}]   ;;  %s3267_s2 = inlined_call_operand.vmem [shape: f32[32,32], index: 2, kind: input, shape index: {}]   ;;  %s3268_s3 = inlined_call_operand.vmem [shape: f32[32,32], index: 3, kind: input, shape index: {}]   ;;  %s3269_s4 = inlined_call_operand.vmem [shape: f32[32,32], index: 4, kind: input, shape index: {}]   ;;  %s3270_s5 = inlined_call_operand.hbm [shape: f32[32,32], index: 5, kind: input, shape index: {}]   ;;  %s3271_s6 = inlined_call_operand.vmem [shape: f32[1,32], index: 6, kind: input, shape index: {}]   ;;  %s3272_s7 = inlined_call_operand.hbm [shape: f32[32,64], index: 7, kind: input, shape index: {}]   ;;  %s3273_s8 = inlined_call_operand.vmem [shape: f32[1,64], index: 8, kind: input, shape index: {}]   ;;  %s3274_s9 = inlined_call_operand.vmem [shape: f32[64,32], index: 9, kind: input, shape index: {}]   ;;  %s3275_s10 = inlined_call_operand.vmem [shape: f32[1,32], index: 10, kind: input, shape index: {}]   ;;  %s3276_s11 = inlined_call_operand.vmem [shape: f32[1,32], index: 11, kind: input, shape index: {}]   ;;  %s3277_s12 = inlined_call_operand.vmem [shape: f32[1,32], index: 12, kind: input, shape index: {}]   ;;  %s3278_s13 = inlined_call_operand.vmem [shape: f32[1,32], index: 13, kind: input, shape index: {}]   ;;  %s3279_s14 = inlined_call_operand.vmem [shape: f32[1,32], index: 14, kind: input, shape index: {}]   ;;  %s3280_s15 = inlined_call_operand.hbm [shape: f32[2,8,32], index: 15, kind: output, shape index: {}]  }
   0x1   :  { %3287 = sst [smem:[#allocation23_spill]] %s3265_s0 }
   0x2   :  { %3288 = sst [smem:[#allocation24_spill]] %s3266_s1 }
   0x3   :  { %3289 = sst [smem:[#allocation25_spill]] %s3270_s5 }
   0x4   :  { %3290 = sst [smem:[#allocation26_spill]] %s3272_s7 }
   0x5   :  { %3291 = sst [smem:[#allocation27_spill]] %s3273_s8 }
   0x6   :  { %3292 = sst [smem:[#allocation28_spill]] %s3275_s10 }
   0x7   :  { %3293 = sst [smem:[#allocation29_spill]] %s3279_s14 }
   0x8   :  { %3294 = sst [smem:[#allocation30_spill]] %s3280_s15 }
   0x9   :  { %20 = vsyncpa [#allocation5], 0 }
   0xa   :  { %22 = vsyncpa [#allocation5 + $0x1], 0 }
   0xb   :  { %23 = vsyncpa [#allocation8], 0 }
   0xc   :  { %25 = vsyncpa [#allocation8 + $0x1], 0 }
   0xd   :  { %26 = vsyncpa [#allocation11], 0 }
   0xe   :  { %27 = vsyncpa [#allocation6], 0 }
   0xf   :  { %29 = vsyncpa [#allocation6 + $0x1], 0  ;;  %s2841_s18 = smov 0   ;;  %s2843_s19 = smov 0  }
  0x10   :  { %s2845_s20 = smov 0   ;;  %s2847_s21 = smov 0  }
  0x11   :  { %s2849_s22 = smov 0   ;;  %s2851_s23 = smov 0  }
  0x12 LB: > { %3295 = sst [smem:[#allocation18_spill]] %s2727_s18  ;;  %s2872_s24 = sadd.s32 4294967295, %s2747_s23   ;;  %s2747_s23 = sphi %s2851_s23, %s35_s23   ;;  %s2743_s22 = sphi %s2849_s22, %s3325_s22   ;;  %s2739_s21 = sphi %s2847_s21, %s3324_s21   ;;  %s2735_s20 = sphi %s2845_s20, %s3328_s20   ;;  %s2731_s19 = sphi %s2843_s19, %s3327_s19   ;;  %s2727_s18 = sphi %s2841_s18, %s3326_s18  }
  0x13   : > { %3296 = sst [smem:[#allocation19_spill]] %s2739_s21  ;;  %s2207_s25 = sadd.s32 4294967294, %s2747_s23  }
  0x14   : > { %3297 = sst [smem:[#allocation20_spill]] %s2743_s22  ;;  %p69_p0 = scmp.ne.s32.totalorder %s2731_s19, %s2727_s18 }
  0x15   : > { %p3284_p1 = scmp.eq.s32.totalorder %s2872_s24, 0  ;;  %p400_p3 = scmp.eq.s32.totalorder %s2207_s25, 1 }
  0x16   : > { %p2208_p5 = scmp.ge.s32.totalorder %s2747_s23, 1  ;;  %p407_p7 = scmp.lt.s32.totalorder %s2747_s23, 3 }
  0x17   : > { %p2881_p4 = por %p3284_p1, %p69_p0  ;;  %p2886_p6 = por %p400_p3, %p69_p0 }
  0x18   : > { %p2891_p8 = pnand %p2208_p5, %p407_p7  ;;  %s2749_s29 = smov [#allocation9]  }
  0x19   : > { %s3299_s27 = scalar_select %p2886_p6, 1, 0 }
  0x1a   : > { %s428_s30 = sshll.u32 %s2749_s29, 4  ;;  %p2444_p9 = pneg %p2891_p8  ;;  %s429_s30 = int_to_ptr.vmem [resolvable:$true] %s428_s30 }
  0x1b   : > { %3300 = sst [smem:[#allocation21_spill]] %s3299_s27  ;;  %s2750_s17 = smov [#allocation10]  }
  0x1c   : > { %p2900_p11 = pnand %p2444_p9, %p3284_p1  ;;  %s444_s25 = sshll.u32 %s2750_s17, 4  ;;  %s445_s25 = int_to_ptr.vmem [resolvable:$true] %s444_s25 }
  0x1d   : > { %s2558_s27 = scalar_lea.vmem %s429_s30, 512  ;;  %p2566_p5 = scmp.lt.s32.totalorder %s429_s30, %s429_s30 }
  0x1e   : > { %p2549_p12 = pneg %p2900_p11  ;;  %p2559_p13 = scmp.ne.s32.totalorder %s429_s30, %s2558_s27 }
  0x1f   : > { %p2567_p7 = scmp.lt.s32.totalorder %s2558_s27, %s2558_s27 }
  0x20   : > { %p2561_p0 = pnand %p2559_p13, %p2549_p12 }
  0x21   : > { %p2568_p10 = por %p2567_p7, %p2566_p5 }
  0x22   : > { %p2562_p3 = pneg %p2561_p0 }
  0x24   : > { %p2569_p9 = pnand %p2568_p10, %p2562_p3 }
  0x26   : > { %2572 = shalt.err (!%p2569_p9)
}
  0x27   : > { %s2751_s29 = smov 128   ;;  %s2752_s18 = smov 8  }
  0x28   : > { %s3303_s5 = sld [smem:[#allocation25_spill]]  ;;  %s2584_s10 = scalar_lea.vmem %s445_s25, 512 }
  0x29   : > { %p2585_p1 = scmp.ne.s32.totalorder %s445_s25, %s2584_s10  ;;  %p2592_p2 = scmp.lt.s32.totalorder %s445_s25, %s445_s25 }
  0x2a   : > { %p2593_p6 = scmp.lt.s32.totalorder %s2584_s10, %s2584_s10 }
  0x2b   : > { %p2587_p13 = pnand %p2585_p1, %p2549_p12 }
  0x2c   : > { %p2594_p5 = por %p2593_p6, %p2592_p2 }
  0x2d   : > { %p2588_p0 = pneg %p2587_p13 }
  0x2e   : > { %2447 = dma.hbm_to_vmem [thread:$0]  (!%p2900_p11), %s3303_s5, 512, %s429_s30, [#allocation8], %s2751_s29, %s2751_s29, %s2752_s18  }
  0x2f   : > { %p2595_p10 = pnand %p2594_p5, %p2588_p0 }
  0x31   : > { %2598 = shalt.err (!%p2595_p10)
}
  0x32   : > { %s3304_s7 = sld [smem:[#allocation26_spill]]  ;;  %s47_s10 = sadd.s32 1, %s2743_s22 }
  0x33   : > { %s56_s15 = sadd.s32 1, %s2735_s20  ;;  %p49_p1 = scmp.ge.s32.totalorder %s47_s10, 2 }
  0x34   : > { %p63_p2 = scmp.ne.s32.totalorder %s2735_s20, %s2731_s19  ;;  %p64_p6 = scmp.eq.s32.totalorder %s2747_s23, 0 }
  0x35   : > { %p2464_p12 = scmp.lt.s32.totalorder %s2747_s23, 2  ;;  %s3330_s10 = smov (%p49_p1, %s47_s10), 0 }
  0x36   : > { %3305 = sst [smem:[#allocation22_spill]] %s3330_s10  ;;  %p65_p3 = por %p64_p6, %p63_p2 }
  0x37   : > { %p3306_p7 = scmp.eq.s32.totalorder %s2872_s24, 1  ;;  %s51_s30 = ssub.s32 %s2743_s22, %s3330_s10 }
  0x38   : > { %2450 = dma.hbm_to_vmem [thread:$0]  (!%p2900_p11), %s3304_s7, 512, %s445_s25, [#allocation11], %s2751_s29, %s2751_s29, %s2752_s18  }
  0x39   : > { %p2932_p9 = por %p3306_p7, %p63_p2  ;;  %s479_s16 = sand.u32 1, %s2735_s20  }
  0x3a   : > { %p54_p13 = scmp.eq.s32.totalorder %s51_s30, 0  ;;  %s2212_s18 = sshll.u32 %s479_s16, 3 }
  0x3b   : > { %s2213_s25 = sshll.u32 %s2743_s22, 7  ;;  %s3308_s0 = sld [smem:[#allocation23_spill]] }
  0x3c   : > { %s2941_s29 = scalar_select %p54_p13, %s2735_s20, %s56_s15  }
  0x3d   : > { %s483_s7 = scalar_lea.vmem [#allocation4], %s2212_s18  ;;  %p2948_p11 = pnand %p2464_p12, %p65_p3 }
  0x3e   : > { %s491_s21 = sshll.u32 %s483_s7, 4  ;;  %s3310_s1 = sld [smem:[#allocation24_spill]]  ;;  %s492_s21 = int_to_ptr.vmem [resolvable:$true] %s491_s21 }
  0x3f   : > { %s480_s15 = scalar_lea.sflag [#allocation5], %s479_s16  ;;  %p2601_p0 = pneg %p2948_p11 }
  0x40   : > { %s2612_s17 = scalar_lea.vmem %s492_s21, 128  ;;  %s2753_s7 = smov [#allocation4]  }
  0x41   : > { %s489_s5 = scalar_lea.hbm %s3308_s0, %s2213_s25  ;;  %p2613_p5 = scmp.ne.s32.totalorder %s492_s21, %s2612_s17 }
  0x42   : > { %s2617_s27 = sshll.u32 %s2753_s7, 4  ;;  %s2618_s27 = int_to_ptr.vmem [resolvable:$false] %s2617_s27 }
  0x43   : > { %p2615_p10 = pnand %p2613_p5, %p2601_p0  ;;  %s2619_s0 = scalar_lea.vmem %s2618_s27, 256 }
  0x44   : > { %s2955_s22 = scalar_lea.hbm %s3310_s1, %s2213_s25  ;;  %p2620_p2 = scmp.lt.s32.totalorder %s492_s21, %s2618_s27 }
  0x45   : > { %p2616_p1 = pneg %p2615_p10  ;;  %p2621_p6 = scmp.lt.s32.totalorder %s2619_s0, %s2612_s17 }
  0x47   : > { %p2622_p12 = por %p2621_p6, %p2620_p2 }
  0x49   : > { %p2623_p3 = pnand %p2622_p12, %p2616_p1 }
  0x4b   : > { %2626 = shalt.err (!%p2623_p3)
}
  0x4c   : > { %2454 = dma.hbm_to_vmem [thread:$0]  (!%p2948_p11), %s489_s5, 128, %s492_s21, %s480_s15  }
  0x4d   : > { %s498_s10 = sand.u32 1, %s2747_s23   ;;  %s502_s16 = scalar_lea.vmem [#allocation7], %s2212_s18 }
  0x4e   : > { %s509_s25 = sshll.u32 %s502_s16, 4  ;;  %s499_s30 = scalar_lea.sflag [#allocation8], %s498_s10  ;;  %s510_s25 = int_to_ptr.vmem [resolvable:$true] %s509_s25 }
  0x4f   : > { %s2640_s1 = scalar_lea.vmem %s510_s25, 128  ;;  %s2754_s0 = smov [#allocation7]  }
  0x50   : > { %p2641_p7 = scmp.ne.s32.totalorder %s510_s25, %s2640_s1  ;;  %s2645_s17 = sshll.u32 %s2754_s0, 4  ;;  %s2646_s17 = int_to_ptr.vmem [resolvable:$false] %s2645_s17 }
  0x51   : > { %s2647_s7 = scalar_lea.vmem %s2646_s17, 256  ;;  %p2648_p10 = scmp.lt.s32.totalorder %s510_s25, %s2646_s17 }
  0x52   : > { %p2643_p13 = pnand %p2641_p7, %p2601_p0  ;;  %p2649_p1 = scmp.lt.s32.totalorder %s2647_s7, %s2640_s1 }
  0x54   : > { %p2644_p5 = pneg %p2643_p13  ;;  %p2650_p2 = por %p2649_p1, %p2648_p10 }
  0x56   : > { %p2651_p6 = pnand %p2650_p2, %p2644_p5 }
  0x58   : > { %2654 = shalt.err (!%p2651_p6)
}
  0x59   : > { %2457 = dma.hbm_to_vmem [thread:$0]  (!%p2948_p11), %s2955_s22, 128, %s510_s25, %s499_s30  }
  0x5a   : > { %518 = sbr.rel (%p2891_p8) target bundleno = 3563 (0xdeb), region = 80  ;;  %s2974_s5 = sand.u32 (!%p2891_p8), 1, %s2731_s19  }
  0x5b   : > { %s2977_s21 = sshll.u32 (!%p2891_p8), %s2974_s5, 3  ;;  %s521_s1 = scalar_lea.sflag (!%p2891_p8), [#allocation5], %s2974_s5 }
  0x5c   : > { %s524_s18 = scalar_lea.vmem (!%p2891_p8), [#allocation4], %s2977_s21 }
  0x5f   : > { %2706 = dma.done.wait (%p2881_p4), %s521_s1, 128  }
  0x60   : > { %2708 = vsyncadd (%p2881_p4), %s521_s1, 4294967168  ;;  %s529_s14 = sand.u32 1, %s2872_s24   ;;  %s533_s28 = scalar_lea.vmem [#allocation7], %s2977_s21 }
  0x61   : > { %s530_s22 = scalar_lea.sflag [#allocation8], %s529_s14 }
  0x62   : > { %2710 = dma.done.wait (%p2881_p4), %s530_s22, 128  }
  0x63   : > { %2712 = vsyncadd (%p2881_p4), %s530_s22, 4294967168  ;;  %p3311_p8 = scmp.eq.s32.totalorder %s2872_s24, 0 }
  0x65   : > { %2714 = dma.done.wait (%p3311_p8), [#allocation8], 512   ;;  %p3312_p11 = pmov %p3311_p8 }
  0x66   : > { %p3313_p0 = pmov %p3311_p8 }
  0x67   : > { %2716 = vsyncadd (%p3312_p11), [#allocation8], 4294966784 }
  0x68   : > { %2718 = dma.done.wait (%p3313_p0), [#allocation11], 512   ;;  %p3314_p12 = pmov %p3313_p0 }
  0x69   : > { %vm600_vm0 = vcmask 261120   ;;  %v599_v0 = vld [vmem:[%s533_s28] sm:$0xff]  ;;  %v2999_v1 = vld [vmem:[%s524_s18] sm:$0xff]  ;;  %v2755_v16 = vmov 0.0   ;;  %vm2756_vm1 = vmmov 0   ;;  %vm891_vm2 = vcmask 64512  }
  0x6a   : > { %2720 = vsyncadd (%p3314_p12), [#allocation11], 4294966784  ;;  %v601_v2 = vsel %vm600_vm0, %v599_v0, 0.0  ;;  %v784_v3 = vsel %vm600_vm0, %v2999_v1, 0.0  ;;  %v632_v14 = vld [vmem:[%s3268_s3 + $0x18] sm:$0xff]  ;;  %2307 = vmatprep.subr.mxu0 %v2755_v16  ;;  %2318 = vmatprep.subr.mxu1 %v2755_v16  ;;  %v631_v17 = vld [vmem:[%s3268_s3 + $0x10] sm:$0xff] }
  0x6b   : > { %602 = vadd.xlane.f32.xlu0 %v601_v2  ;;  %v710_v15 = vld [vmem:[%s3269_s4 + $0x18] sm:$0xff]  ;;  %v709_v18 = vld [vmem:[%s3269_s4 + $0x10] sm:$0xff]  ;;  %2308 = vmatpush3.msra.mxu0 %v632_v14  ;;  %v630_v19 = vld [vmem:[%s3268_s3 + $0x8] sm:$0xff]  ;;  %s2757_s18 = smov 120   ;;  %s2758_s14 = smov 112   ;;  %vm1985_vm3 = vcmask 523264  }
  0x6c   : > { %2319 = vmatpush3.msra.mxu1 %v710_v15  ;;  %2309 = vmatprep.subr.mxu0 %v2755_v16  ;;  %v708_v20 = vld [vmem:[%s3269_s4 + $0x8] sm:$0xff]  ;;  %v629_v21 = vld [vmem:[%s3268_s3] sm:$0xff]  ;;  %v815_v37 = vld [vmem:[%s3267_s2 + $0x18] sm:$0xff]  ;;  %s2759_s22 = smov 104   ;;  %s3315_s28 = sld [smem:[#allocation29_spill]] }
  0x6d   : > { %2320 = vmatprep.subr.mxu1 %v2755_v16  ;;  %2310 = vmatpush3.msra.mxu0 %v631_v17  ;;  %v707_v22 = vld [vmem:[%s3269_s4] sm:$0xff]  ;;  %v814_v38 = vld [vmem:[%s3267_s2 + $0x10] sm:$0xff]  ;;  %v813_v40 = vld [vmem:[%s3267_s2 + $0x8] sm:$0xff]  ;;  %s3316_s15 = sld [smem:[#allocation19_spill]]  ;;  %s2070_s16 = scalar_lea.sflag [#allocation6], %s2974_s5 }
  0x6e   : > { %2321 = vmatpush3.msra.mxu1 %v709_v18  ;;  %2311 = vmatprep.subr.mxu0 %v2755_v16  ;;  %v2252_v30 = vld [vmem:[%s3276_s11] ss:$0 sm:$0xff]  ;;  %v1054_v17 = vld [vmem:[#allocation9] sm:$0xff]  ;;  %s3317_s17 = sld [smem:[#allocation27_spill]] }
  0x6f   : > { %785 = vadd.xlane.f32.xlu0 %v784_v3  ;;  %2322 = vmatprep.subr.mxu1 %v2755_v16  ;;  %v2253_v32 = vld [vmem:[%s3277_s12] ss:$0 sm:$0xff]  ;;  %s3319_s27 = sld [smem:[#allocation30_spill]] }
  0x70   : > { %2312 = vmatpush3.msra.mxu0 %v630_v19  ;;  %2323 = vmatpush3.msra.mxu1 %v708_v20  ;;  %v812_v41 = vld [vmem:[%s3267_s2] sm:$0xff] }
  0x71   : > { %2313 = vmatprep.subr.mxu0 %v2755_v16  ;;  %2324 = vmatprep.subr.mxu1 %v2755_v16 }
  0x72   : > { %2314 = vmatpush3.msra.mxu0 %v629_v21  ;;  %2315 = vmatprep.mubr.msk.f32.mxu0 %vm2756_vm1, %v2755_v16 }
  0x73   : > { %2325 = vmatpush3.msra.mxu1 %v707_v22  ;;  %2326 = vmatprep.mubr.msk.f32.mxu1 %vm2756_vm1, %v2755_v16 }
  0x74   : > { %2329 = vmatprep.subr.mxu0 %v2755_v16  ;;  %2345 = vmatprep.subr.mxu1 %v2755_v16 }
  0xf4   : > { %v603_v4 = vpop.xlane.xlu0 %602 }
  0xf5   : > { %v605_v5 = vmul.f32 0.03125, %v603_v4 }
  0xf7   : > { %v606_v6 = vsub.f32 %v599_v0, %v605_v5 }
  0xf8   : > { %v786_v7 = vpop.xlane.xlu0 %785 }
  0xf9   : > { %v788_v8 = vmul.f32 0.03125, %v786_v7  ;;  %v607_v9 = vmul.f32 %v606_v6, %v606_v6 }
  0xfb   : > { %v789_v10 = vsub.f32 %v2999_v1, %v788_v8  ;;  %v608_v11 = vsel %vm600_vm0, %v607_v9, 0.0 }
  0xfc   : > { %609 = vadd.xlane.f32.xlu1 %v608_v11 }
  0xfd   : > { %v790_v12 = vmul.f32 %v789_v10, %v789_v10 }
  0xff   : > { %v791_v13 = vsel %vm600_vm0, %v790_v12, 0.0  ;;  %v1223_v12 = vld [vmem:[#allocation9 + $0x8] sm:$0xff] }
 0x100   : > { %792 = vadd.xlane.f32.xlu1 %v791_v13 }
 0x185   : > { %v610_v23 = vpop.xlane.xlu1 %609 }
 0x186   : > { %v611_v24 = vmul.f32 0.03125, %v610_v23 }
 0x188   : > { %v612_v25 = vadd.f32 1e-05, %v611_v24 }
 0x189   : > { %v793_v26 = vpop.xlane.xlu1 %792 }
 0x18a   : > { %2525 = vrsqrt.f32 %v612_v25  ;;  %v794_v27 = vmul.f32 0.03125, %v793_v26 }
 0x18c   : > { %v795_v28 = vadd.f32 1e-05, %v794_v27 }
 0x18e   : > { %2527 = vrsqrt.f32 %v795_v28 }
 0x197   : > { %v2526_v29 = vpop.eup %2525 }
 0x198   : > { %v614_v31 = vmul.f32 %v2526_v29, %v606_v6 }
 0x19a   : > { %v621_v33 = vmul.f32 %v2252_v30, %v614_v31 }
 0x19b   : > { %v2528_v34 = vpop.eup %2527 }
 0x19c   : > { %v628_v35 = vadd.f32 %v2253_v32, %v621_v33  ;;  %v797_v36 = vmul.f32 %v2528_v34, %v789_v10 }
 0x19e   : > { %2316 = vmatmul.mubr.msk.f32.vlgmr.msra.gmra.mxu0 %vm600_vm0, %v628_v35  ;;  %2327 = vmatmul.mubr.msk.f32.vlgmr.msra.gmra.mxu1 %vm600_vm0, %v628_v35  ;;  %v804_v39 = vmul.f32 %v2252_v30, %v797_v36 }
 0x19f   : > { %2330 = vmatpush3.msra.mxu0 %v815_v37  ;;  %2337 = vmatprep.mubr.msk.f32.mxu0 %vm2756_vm1, %v2755_v16 }
 0x1a0   : > { %2331 = vmatprep.subr.mxu0 %v2755_v16  ;;  %2347 = vmatprep.mubr.msk.f32.mxu1 %vm2756_vm1, %v2755_v16  ;;  %v811_v42 = vadd.f32 %v2253_v32, %v804_v39 }
 0x1a1   : > { %2332 = vmatpush3.msra.mxu0 %v814_v38 }
 0x1a2   : > { %2333 = vmatprep.subr.mxu0 %v2755_v16 }
 0x1a3   : > { %2334 = vmatpush3.msra.mxu0 %v813_v40 }
 0x1a4   : > { %2335 = vmatprep.subr.mxu0 %v2755_v16 }
 0x1a5   : > { %2336 = vmatpush3.msra.mxu0 %v812_v41 }
 0x1a6   : > { %2338 = vmatmul.mubr.msk.f32.vlgmr.msra.gmra.mxu0 %vm600_vm0, %v811_v42  ;;  %2340 = vmatprep.subr.mxu0 %v2755_v16 }
 0x1a7   : > { %2342 = vmatprep.mubr.msk.f32.mxu0 %vm2756_vm1, %v2755_v16 }
 0x25e   : > { %v702_v43 = vpop.f32.mrf.mxu0  ;;  %v777_v44 = vpop.f32.mrf.mxu1 }
 0x25f   : > { %706 = vst.msk [vmem:[#allocation2] sm:$0xff] %vm600_vm0, %v702_v43  ;;  %781 = vst.msk [vmem:[#allocation3] sm:$0xff] %vm600_vm0, %v777_v44  ;;  %v1537_v43 = vld [vmem:[#allocation9 + $0x10] sm:$0xff] }
 0x260   : > { %v2317_v45 = vpop.f32.mrf.mxu0  ;;  %v2328_v46 = vpop.f32.mrf.mxu1 }
 0x266   : > { %v3078_v47 = vpop.f32.mrf.mxu0  ;;  %v3080_v48 = vld [vmem:[#allocation3] sm:$0xff]  ;;  %v3082_v49 = vld [vmem:[#allocation2] sm:$0xff] }
 0x267   : > { %1055 = vrot.lane.b32.xlu1 %v3078_v47, %s2757_s18  ;;  %2346 = vmatpush3.msra.mxu1 %v3080_v48 }
 0x268   : > { %1057 = vrot.lane.b32.xlu0 %v3082_v49, %s2757_s18  ;;  %v2339_v50 = vpop.f32.mrf.mxu0  ;;  %2341 = vmatpush3.xpose.msk.msra.mxu0 %vm891_vm2, %v3082_v49 }
 0x269   : > { %2350 = vmatprep.subr.mxu0 %v2755_v16  ;;  %2355 = vmatprep.subr.mxu1 %v2755_v16 }
 0x26b   : > { %2343 = vmatmul.mubr.msk.f32.vlgmr.msra.gmra.mxu0 %vm891_vm2, %v3078_v47 }
 0x26c   : > { %2352 = vmatprep.mubr.msk.f32.mxu0 %vm2756_vm1, %v2755_v16 }
 0x2d9   : > { %v1056_v52 = vpop.permute.xlu1 %1055 }
 0x2da   : > { %v1058_v51 = vpop.permute.xlu0 %1057 }
 0x2db   : > { %2351 = vmatpush3.xpose.msk.msra.mxu0 %vm891_vm2, %v1058_v51 }
 0x2dc   : > { %2360 = vmatprep.subr.mxu0 %v2755_v16 }
 0x2de   : > { %2353 = vmatmul.mubr.msk.f32.vlgmr.msra.gmra.mxu0 %vm891_vm2, %v1056_v52 }
 0x2df   : > { %2362 = vmatprep.mubr.msk.f32.mxu0 %vm2756_vm1, %v2755_v16  ;;  %2361 = vmatpush3.msra.mxu0 %v1223_v12 }
 0x2e0   : > { %2370 = vmatprep.subr.mxu0 %v2755_v16 }
 0x32b   : > { %v964_v53 = vpop.f32.mrf.mxu0 }
 0x32c   : > { %v968_v54 = vmul.f32 0.35355338, %v964_v53 }
 0x32d   : > { %v2344_v55 = vpop.f32.mrf.mxu0 }
 0x32e   : > { %v969_v56 = vsel %vm891_vm2, %v968_v54, -inf }
 0x32f   : > { %970 = vmax.xlane.f32.xlu1 %v969_v56 }
 0x39e   : > { %v1129_v57 = vpop.f32.mrf.mxu0 }
 0x39f   : > { %v1133_v58 = vmul.f32 0.35355338, %v1129_v57  ;;  %v1779_v57 = vld [vmem:[#allocation9 + $0x18] sm:$0xff] }
 0x3a0   : > { %v2354_v59 = vpop.f32.mrf.mxu0 }
 0x3a1   : > { %v1134_v60 = vsel %vm891_vm2, %v1133_v58, -inf }
 0x3a2   : > { %1135 = vmax.xlane.f32.xlu0 %v1134_v60 }
 0x3b8   : > { %v971_v61 = vpop.xlane.xlu1 %970 }
 0x3b9   : > { %v972_v62 = vsub.f32 %v968_v54, %v971_v61 }
 0x3bb   : > { %v973_v63 = vmul.f32 1.442695, %v972_v62 }
 0x3bd   : > { %2529 = vpow2.f32 %v973_v63 }
 0x3ca   : > { %v2530_v0 = vpop.eup %2529 }
 0x3cb   : > { %v975_v2 = vsel %vm891_vm2, %v2530_v0, 0.0 }
 0x3cc   : > { %976 = vadd.xlane.f32.xlu0 %v975_v2 }
 0x3e2   : > { %1147 = vrot.lane.b32.xlu0 %v3080_v48, %s2757_s18  ;;  %s3318_s18 = sld [smem:[#allocation28_spill]] }
 0x42b   : > { %v1136_v3 = vpop.xlane.xlu0 %1135 }
 0x42c   : > { %v1137_v4 = vsub.f32 %v1133_v58, %v1136_v3 }
 0x42e   : > { %v1138_v5 = vmul.f32 1.442695, %v1137_v4 }
 0x430   : > { %2531 = vpow2.f32 %v1138_v5  ;;  %v2241_v5 = vld [vmem:[%s3271_s6] ss:$0 sm:$0xff] }
 0x43d   : > { %v2532_v6 = vpop.eup %2531 }
 0x43e   : > { %v1140_v7 = vsel %vm891_vm2, %v2532_v6, 0.0 }
 0x43f   : > { %1141 = vadd.xlane.f32.xlu1 %v1140_v7 }
 0x450   : > { %1372 = vrot.lane.b32.xlu1 %v3082_v49, %s2758_s14 }
 0x454   : > { %1370 = vrot.lane.b32.xlu1 %v3078_v47, %s2758_s14 }
 0x455   : > { %v977_v8 = vpop.xlane.xlu0 %976 }
 0x456   : > { %2533 = vrcp.f32 %v977_v8 }
 0x459   : > { %v1148_v11 = vpop.permute.xlu0 %1147 }
 0x463   : > { %v2534_v9 = vpop.eup %2533 }
 0x464   : > { %v980_v10 = vmul.f32 %v2534_v9, %v2530_v0 }
 0x466   : > { %2348 = vmatmul.mubr.msk.f32.vlgmr.msra.gmra.mxu1 %vm891_vm2, %v980_v10 }
 0x467   : > { %2356 = vmatpush3.msra.mxu1 %v1148_v11  ;;  %2357 = vmatprep.mubr.msk.f32.mxu1 %vm2756_vm1, %v2755_v16 }
 0x468   : > { %2365 = vmatprep.subr.mxu1 %v2755_v16 }
 0x4c8   : > { %v1142_v13 = vpop.xlane.xlu1 %1141 }
 0x4c9   : > { %2535 = vrcp.f32 %v1142_v13 }
 0x4cc   : > { %v1373_v20 = vpop.permute.xlu1 %1372 }
 0x4d0   : > { %v1371_v23 = vpop.permute.xlu1 %1370 }
 0x4d6   : > { %v2536_v14 = vpop.eup %2535 }
 0x4d7   : > { %v1145_v15 = vmul.f32 %v2536_v14, %v2532_v6 }
 0x4d9   : > { %2358 = vmatmul.mubr.msk.f32.vlgmr.msra.gmra.mxu1 %vm891_vm2, %v1145_v15  ;;  %v1895_v15 = vld [vmem:[#allocation10 + $0x18] sm:$0xff] }
 0x4da   : > { %2366 = vmatpush3.msra.mxu1 %v1054_v17  ;;  %2367 = vmatprep.mubr.msk.f32.mxu1 %vm2756_vm1, %v2755_v16  ;;  %v1894_v17 = vld [vmem:[#allocation10 + $0x10] sm:$0xff] }
 0x4db   : > { %2375 = vmatprep.subr.mxu1 %v2755_v16 }
 0x526   : > { %v1050_v18 = vpop.f32.mrf.mxu1 }
 0x527   : > { %2368 = vmatmul.mubr.msk.f32.vlgmr.msra.gmra.mxu1 %vm891_vm2, %v1050_v18  ;;  %v1892_v18 = vld [vmem:[#allocation10] sm:$0xff] }
 0x528   : > { %v2349_v19 = vpop.f32.mrf.mxu1  ;;  %2377 = vmatprep.mubr.msk.f32.mxu1 %vm2756_vm1, %v2755_v16 }
 0x529   : > { %v1904_v19 = vld [vmem:[%s3274_s9 + $0x38] sm:$0xff] }
 0x599   : > { %v1219_v21 = vpop.f32.mrf.mxu1 }
 0x59a   : > { %2363 = vmatmul.mubr.msk.f32.vlgmr.msra.gmra.mxu0 %vm891_vm2, %v1219_v21  ;;  %v1902_v21 = vld [vmem:[%s3274_s9 + $0x28] sm:$0xff] }
 0x59b   : > { %2371 = vmatpush3.xpose.msk.msra.mxu0 %vm891_vm2, %v1373_v20  ;;  %v2359_v22 = vpop.f32.mrf.mxu1  ;;  %2372 = vmatprep.mubr.msk.f32.mxu0 %vm2756_vm1, %v2755_v16  ;;  %v1903_v20 = vld [vmem:[%s3274_s9 + $0x30] sm:$0xff] }
 0x59c   : > { %2380 = vmatprep.subr.mxu0 %v2755_v16  ;;  %v1901_v22 = vld [vmem:[%s3274_s9 + $0x20] sm:$0xff] }
 0x59e   : > { %2373 = vmatmul.mubr.msk.f32.vlgmr.msra.gmra.mxu0 %vm891_vm2, %v1371_v23  ;;  %v1900_v23 = vld [vmem:[%s3274_s9 + $0x18] sm:$0xff] }
 0x59f   : > { %2382 = vmatprep.mubr.msk.f32.mxu0 %vm2756_vm1, %v2755_v16  ;;  %2381 = vmatpush3.msra.mxu0 %v1537_v43 }
 0x5a0   : > { %2390 = vmatprep.subr.mxu0 %v2755_v16 }
 0x5e7   : > { %v1366_v24 = vpop.f32.mrf.mxu1 }
 0x5e9   : > { %v2369_v25 = vpop.f32.mrf.mxu1 }
 0x65a   : > { %v1293_v26 = vpop.f32.mrf.mxu0 }
 0x65b   : > { %v1367_v58 = vadd.f32 %v1366_v24, %v1293_v26 }
 0x65c   : > { %v2364_v27 = vpop.f32.mrf.mxu0 }
 0x65e   : > { %v1444_v28 = vpop.f32.mrf.mxu0 }
 0x65f   : > { %v1448_v29 = vmul.f32 0.35355338, %v1444_v28  ;;  %v2242_v28 = vld [vmem:[%s3278_s13] ss:$0 sm:$0xff] }
 0x660   : > { %v2374_v30 = vpop.f32.mrf.mxu0 }
 0x661   : > { %v1449_v31 = vsel %vm891_vm2, %v1448_v29, -inf  ;;  %v2243_v30 = vld [vmem:[%s3315_s28] ss:$0 sm:$0xff] }
 0x662   : > { %1450 = vmax.xlane.f32.xlu1 %v1449_v31 }
 0x673   : > { %1614 = vrot.lane.b32.xlu1 %v3082_v49, %s2759_s22 }
 0x677   : > { %1612 = vrot.lane.b32.xlu1 %v3078_v47, %s2759_s22 }
 0x6eb   : > { %v1451_v32 = vpop.xlane.xlu1 %1450 }
 0x6ec   : > { %v1452_v33 = vsub.f32 %v1448_v29, %v1451_v32 }
 0x6ee   : > { %v1453_v34 = vmul.f32 1.442695, %v1452_v33  ;;  %v1899_v33 = vld [vmem:[%s3274_s9 + $0x10] sm:$0xff] }
 0x6ef   : > { %v1615_v40 = vpop.permute.xlu1 %1614 }
 0x6f0   : > { %2537 = vpow2.f32 %v1453_v34  ;;  %v1898_v34 = vld [vmem:[%s3274_s9 + $0x8] sm:$0xff] }
 0x6f3   : > { %v1613_v42 = vpop.permute.xlu1 %1612 }
 0x6fd   : > { %v2538_v35 = vpop.eup %2537 }
 0x6fe   : > { %v1455_v36 = vsel %vm891_vm2, %v2538_v35, 0.0 }
 0x6ff   : > { %1456 = vadd.xlane.f32.xlu0 %v1455_v36  ;;  %v2244_v36 = vld [vmem:[%s3317_s17] ss:$0 sm:$0xff] }
 0x715   : > { %1461 = vrot.lane.b32.xlu0 %v3080_v48, %s2758_s14  ;;  %s2249_s14 = sshll.u32 %s3316_s15, 7  ;;  %s2760_s15 = smov [#allocation12]  }
 0x716   : > { %s2082_s10 = scalar_lea.hbm %s3319_s27, %s2249_s14 }
 0x788   : > { %v1457_v37 = vpop.xlane.xlu0 %1456 }
 0x789   : > { %2539 = vrcp.f32 %v1457_v37 }
 0x78c   : > { %v1462_v38 = vpop.permute.xlu0 %1461 }
 0x78d   : > { %2376 = vmatpush3.msra.mxu1 %v1462_v38 }
 0x78e   : > { %2385 = vmatprep.subr.mxu1 %v2755_v16 }
 0x796   : > { %v2540_v39 = vpop.eup %2539 }
 0x797   : > { %v1460_v41 = vmul.f32 %v2540_v39, %v2538_v35  ;;  %v1897_v35 = vld [vmem:[%s3274_s9] sm:$0xff] }
 0x799   : > { %2378 = vmatmul.mubr.msk.f32.vlgmr.msra.gmra.mxu1 %vm891_vm2, %v1460_v41 }
 0x79a   : > { %2386 = vmatpush3.xpose.msk.msra.mxu1 %vm891_vm2, %v1615_v40  ;;  %2387 = vmatprep.mubr.msk.f32.mxu1 %vm2756_vm1, %v2755_v16 }
 0x79b   : > { %2395 = vmatprep.subr.mxu1 %v2755_v16 }
 0x79d   : > { %2388 = vmatmul.mubr.msk.f32.vlgmr.msra.gmra.mxu1 %vm891_vm2, %v1613_v42  ;;  %v2247_v42 = vld [vmem:[%s3318_s18] ss:$0 sm:$0xff] }
 0x79e   : > { %2397 = vmatprep.mubr.msk.f32.mxu1 %vm2756_vm1, %v2755_v16  ;;  %2396 = vmatpush3.msra.mxu1 %v1779_v57 }
 0x79f   : > { %2411 = vmatprep.subr.mxu1 %v2755_v16 }
 0x859   : > { %v1533_v44 = vpop.f32.mrf.mxu1 }
 0x85a   : > { %2383 = vmatmul.mubr.msk.f32.vlgmr.msra.gmra.mxu0 %vm891_vm2, %v1533_v44 }
 0x85b   : > { %v2379_v45 = vpop.f32.mrf.mxu1  ;;  %2392 = vmatprep.mubr.msk.f32.mxu0 %vm2756_vm1, %v2755_v16 }
 0x85d   : > { %v1686_v46 = vpop.f32.mrf.mxu1 }
 0x85e   : > { %v1690_v47 = vmul.f32 0.35355338, %v1686_v46 }
 0x85f   : > { %v2389_v49 = vpop.f32.mrf.mxu1 }
 0x860   : > { %v1691_v50 = vsel %vm891_vm2, %v1690_v47, -inf }
 0x861   : > { %1692 = vmax.xlane.f32.xlu0 %v1691_v50 }
 0x877   : > { %1703 = vrot.lane.b32.xlu0 %v3080_v48, %s2759_s22  ;;  %s592_s22 = scalar_lea.vmem [#allocation12], %s2977_s21  ;;  %s2659_s21 = sshll.u32 %s2760_s15, 4  ;;  %s2660_s21 = int_to_ptr.vmem [resolvable:$false] %s2659_s21 }
 0x878   : > { %s2084_s28 = sshll.u32 %s592_s22, 4  ;;  %s2661_s30 = scalar_lea.vmem %s2660_s21, 256  ;;  %s2085_s28 = int_to_ptr.vmem [resolvable:$true] %s2084_s28 }
 0x879   : > { %s2655_s25 = scalar_lea.vmem %s2085_s28, 128  ;;  %p2662_p13 = scmp.lt.s32.totalorder %s2085_s28, %s2660_s21 }
 0x87a   : > { %p2656_p4 = scmp.ne.s32.totalorder %s2085_s28, %s2655_s25  ;;  %p2663_p5 = scmp.lt.s32.totalorder %s2661_s30, %s2655_s25 }
 0x87c   : > { %p2657_p3 = pnand %p2656_p4, %p2932_p9  ;;  %p2664_p10 = por %p2663_p5, %p2662_p13 }
 0x87e   : > { %p2658_p7 = pneg %p2657_p3 }
 0x880   : > { %p2665_p1 = pnand %p2664_p10, %p2658_p7 }
 0x8ea   : > { %v1693_v51 = vpop.xlane.xlu0 %1692 }
 0x8eb   : > { %v1694_v52 = vsub.f32 %v1690_v47, %v1693_v51 }
 0x8ed   : > { %v1695_v53 = vmul.f32 1.442695, %v1694_v52 }
 0x8ee   : > { %v1704_v54 = vpop.permute.xlu0 %1703 }
 0x8ef   : > { %2541 = vpow2.f32 %v1695_v53  ;;  %2391 = vmatpush3.msra.mxu0 %v1704_v54 }
 0x8f0   : > { %2400 = vmatprep.subr.mxu0 %v2755_v16 }
 0x8fc   : > { %v2542_v55 = vpop.eup %2541 }
 0x8fd   : > { %v1697_v56 = vsel %vm891_vm2, %v2542_v55, 0.0 }
 0x8fe   : > { %1698 = vadd.xlane.f32.xlu1 %v1697_v56 }
 0x91a   : > { %v1607_v59 = vpop.f32.mrf.mxu0 }
 0x91b   : > { %v1611_v60 = vadd.f32 %v1607_v59, %v1367_v58 }
 0x91c   : > { %v2384_v48 = vpop.f32.mrf.mxu0 }
 0x987   : > { %v1699_v61 = vpop.xlane.xlu1 %1698 }
 0x988   : > { %2543 = vrcp.f32 %v1699_v61 }
 0x995   : > { %v2544_v62 = vpop.eup %2543 }
 0x996   : > { %v1702_v63 = vmul.f32 %v2544_v62, %v2542_v55 }
 0x998   : > { %2393 = vmatmul.mubr.msk.f32.vlgmr.msra.gmra.mxu0 %vm891_vm2, %v1702_v63 }
 0x999   : > { %2408 = vmatprep.mubr.msk.f32.mxu0 %vm2756_vm1, %v2755_v16  ;;  %2401 = vmatpush3.msra.mxu0 %v1895_v15 }
 0x99a   : > { %2402 = vmatprep.subr.mxu0 %v2755_v16 }
 0x99b   : > { %2403 = vmatpush3.msra.mxu0 %v1894_v17 }
 0x99c   : > { %2404 = vmatprep.subr.mxu0 %v2755_v16 }
 0xa58   : > { %v1775_v0 = vpop.f32.mrf.mxu0 }
 0xa59   : > { %2398 = vmatmul.mubr.msk.f32.vlgmr.msra.gmra.mxu1 %vm891_vm2, %v1775_v0 }
 0xa5a   : > { %v2394_v2 = vpop.f32.mrf.mxu0  ;;  %2427 = vmatprep.mubr.msk.f32.mxu1 %vm2756_vm1, %v2755_v16  ;;  %2412 = vmatpush3.msra.mxu1 %v1904_v19 }
 0xa5b   : > { %2413 = vmatprep.subr.mxu1 %v2755_v16 }
 0xa5c   : > { %2414 = vmatpush3.msra.mxu1 %v1903_v20 }
 0xa5d   : > { %2415 = vmatprep.subr.mxu1 %v2755_v16 }
 0xa5e   : > { %2416 = vmatpush3.msra.mxu1 %v1902_v21 }
 0xa5f   : > { %2417 = vmatprep.subr.mxu1 %v2755_v16 }
 0xa60   : > { %2418 = vmatpush3.msra.mxu1 %v1901_v22 }
 0xa61   : > { %2419 = vmatprep.subr.mxu1 %v2755_v16 }
 0xa62   : > { %2420 = vmatpush3.msra.mxu1 %v1900_v23 }
 0xa63   : > { %2421 = vmatprep.subr.mxu1 %v2755_v16 }
 0xa64   : > { %2422 = vmatpush3.msra.mxu1 %v1899_v33 }
 0xa65   : > { %2423 = vmatprep.subr.mxu1 %v2755_v16 }
 0xa66   : > { %2424 = vmatpush3.msra.mxu1 %v1898_v34 }
 0xa67   : > { %2425 = vmatprep.subr.mxu1 %v2755_v16 }
 0xa68   : > { %2426 = vmatpush3.msra.mxu1 %v1897_v35 }
 0xb19   : > { %v1849_v3 = vpop.f32.mrf.mxu1 }
 0xb1a   : > { %v1853_v4 = vadd.f32 %v1849_v3, %v1611_v60 }
 0xb1b   : > { %v2399_v6 = vpop.f32.mrf.mxu1 }
 0xb1c   : > { %v1854_v7 = vadd.f32 %v1853_v4, %v2999_v1  ;;  %v1893_v1 = vld [vmem:[#allocation10 + $0x8] sm:$0xff] }
 0xb1d   : > { %2405 = vmatpush3.msra.mxu0 %v1893_v1 }
 0xb1e   : > { %v3169_v8 = vadd.f32 %v2241_v5, %v1854_v7  ;;  %2406 = vmatprep.subr.mxu0 %v2755_v16 }
 0xb1f   : > { %2407 = vmatpush3.msra.mxu0 %v1892_v18 }
 0xb20   : > { %v1865_v9 = vsel %vm600_vm0, %v3169_v8, 0.0 }
 0xb21   : > { %1866 = vadd.xlane.f32.xlu1 %v1865_v9 }
 0xbaa   : > { %v1867_v10 = vpop.xlane.xlu1 %1866 }
 0xbab   : > { %v1868_v11 = vmul.f32 0.03125, %v1867_v10 }
 0xbad   : > { %v1869_v12 = vsub.f32 %v3169_v8, %v1868_v11 }
 0xbaf   : > { %v1870_v13 = vmul.f32 %v1869_v12, %v1869_v12 }
 0xbb1   : > { %v1871_v14 = vsel %vm600_vm0, %v1870_v13, 0.0 }
 0xbb2   : > { %1872 = vadd.xlane.f32.xlu1 %v1871_v14 }
 0xc3b   : > { %v1873_v24 = vpop.xlane.xlu1 %1872 }
 0xc3c   : > { %v1874_v25 = vmul.f32 0.03125, %v1873_v24 }
 0xc3e   : > { %v1875_v26 = vadd.f32 1e-05, %v1874_v25 }
 0xc40   : > { %2545 = vrsqrt.f32 %v1875_v26 }
 0xc4d   : > { %v2546_v27 = vpop.eup %2545 }
 0xc4e   : > { %v1877_v29 = vmul.f32 %v2546_v27, %v1869_v12 }
 0xc50   : > { %v1884_v31 = vmul.f32 %v2242_v28, %v1877_v29 }
 0xc52   : > { %v1891_v32 = vadd.f32 %v2243_v30, %v1884_v31 }
 0xc54   : > { %2409 = vmatmul.mubr.msk.f32.vlgmr.msra.gmra.mxu0 %vm600_vm0, %v1891_v32 }
 0xd14   : > { %v1980_v37 = vpop.f32.mrf.mxu0 }
 0xd15   : > { %v1981_v38 = vadd.f32 %v2244_v36, %v1980_v37 }
 0xd16   : > { %v2410_v39 = vpop.f32.mrf.mxu0 }
 0xd17   : > { %v1984_v40 = vmax.f32 %v1981_v38, 0.0 }
 0xd19   : > { %2428 = vmatmul.mubr.msk.f32.vlgmr.msra.gmra.mxu1 %vm1985_vm3, %v1984_v40 }
 0xdd9   : > { %v2055_v41 = vpop.f32.mrf.mxu1 }
 0xdda   : > { %v2059_v16 = vadd.f32 %v2055_v41, %v3169_v8 }
 0xddb   : > { %v2429_v43 = vpop.f32.mrf.mxu1 }
 0xddc   : > { %v2067_v44 = vadd.f32 %v2247_v42, %v2059_v16 }
 0xdde   : > { %2068 = vst.msk [vmem:[%s592_s22] sm:$0xff] %vm600_vm0, %v2067_v44 }
 0xddf   : > { %2668 = shalt.err (!%p2665_p1)
}
 0xde0   : > { %s2669_s0 = scalar_lea.hbm %s2082_s10, 128  ;;  %s2673_s7 = scalar_lea.hbm %s3319_s27, 256 }
 0xde1   : > { %p2670_p2 = scmp.ne.s32.totalorder %s2082_s10, %s2669_s0  ;;  %p2674_p11 = scmp.lt.s32.totalorder %s2082_s10, %s3319_s27 }
 0xde2   : > { %p2675_p0 = scmp.lt.s32.totalorder %s2673_s7, %s2669_s0 }
 0xde3   : > { %p2671_p6 = pnand %p2670_p2, %p2932_p9 }
 0xde4   : > { %p2676_p12 = por %p2675_p0, %p2674_p11 }
 0xde5   : > { %p2672_p8 = pneg %p2671_p6 }
 0xde7   : > { %p2677_p4 = pnand %p2676_p12, %p2672_p8 }
 0xde9   : > { %2680 = shalt.err (!%p2677_p4)
}
 0xdea   : > { %2442 = dma.vmem_to_hbm [thread:$0]  (%p2932_p9), %s2085_s28, 128, %s2082_s10, %s2070_s16  }
 0xdeb PF: > { %s3320_s14 = sld [smem:[#allocation18_spill]]  ;;  %p3323_p7 = scmp.ge.s32.totalorder %s2747_s23, 2 }
 0xdec   : > { %s3321_s22 = sld [smem:[#allocation21_spill]] }
 0xdf1   : > { %s2096_s24 = sand.u32 1, %s3320_s14  }
 0xdf2   : > { %p3322_p3 = scmp.ne.s32.totalorder %s3321_s22, 0  ;;  %s2097_s26 = scalar_lea.sflag [#allocation6], %s2096_s24 }
 0xdf4   : > { %p2459_p13 = pnand %p3323_p7, %p3322_p3 }
 0xdf6   : > { %p2460_p5 = pneg %p2459_p13 }
 0xdf8   : > { %2722 = dma.done.wait (%p2460_p5), %s2097_s26, 128  }
 0xdf9   : > { %2724 = vsyncadd (%p2460_p5), %s2097_s26, 4294967168  ;;  %s35_s23 = sadd.s32 1, %s2747_s23   ;;  %s3324_s21 = sld [smem:[#allocation20_spill]] }
 0xdfa   : > { %p32_p10 = scmp.ge.s32.totalorder %s35_s23, 4   ;;  %s3325_s22 = sld [smem:[#allocation22_spill]] }
 0xdfb   : > { %s3326_s18 = smov %s2731_s19  ;;  %s3327_s19 = smov %s2735_s20 }
 0xdfc   : > { %s3328_s20 = smov %s2941_s29  ;;  %34 = sbr.rel (!%p32_p10) target bundleno = 18 (0x12), region = 150 }
 0xe01   :  { %2102 = vsyncpa [#allocation5], 1 }
 0xe02   :  { %2104 = vsyncpa [#allocation5 + $0x1], 1 }
 0xe03   :  { %2105 = vsyncpa [#allocation8], 1 }
 0xe04   :  { %2107 = vsyncpa [#allocation8 + $0x1], 1 }
 0xe05   :  { %2108 = vsyncpa [#allocation11], 1 }
 0xe06   :  { %2109 = vsyncpa [#allocation6], 1 }
 0xe07   :  { %2111 = vsyncpa [#allocation6 + $0x1], 1 }

// kernel: tpu_custom_call.1
= control target key start
LH: loop header
LB: loop body
LE: loop exit
PB: predicated region body
PF: predicated region fallthrough
CT: control target
= control target key end

     0   :  { %s3265_s0 = inlined_call_operand.hbm [shape: f32[2,8,32], index: 0, kind: input, shape index: {}]   ;;  %s3266_s1 = inlined_call_operand.hbm [shape: f32[2,8,32], index: 1, kind: input, shape index: {}]   ;;  %s3267_s2 = inlined_call_operand.vmem [shape: f32[32,32], index: 2, kind: input, shape index: {}]   ;;  %s3268_s3 = inlined_call_operand.vmem [shape: f32[32,32], index: 3, kind: input, shape index: {}]   ;;  %s3269_s4 = inlined_call_operand.vmem [shape: f32[32,32], index: 4, kind: input, shape index: {}]   ;;  %s3270_s5 = inlined_call_operand.hbm [shape: f32[32,32], index: 5, kind: input, shape index: {}]   ;;  %s3271_s6 = inlined_call_operand.vmem [shape: f32[1,32], index: 6, kind: input, shape index: {}]   ;;  %s3272_s7 = inlined_call_operand.hbm [shape: f32[32,64], index: 7, kind: input, shape index: {}]   ;;  %s3273_s8 = inlined_call_operand.vmem [shape: f32[1,64], index: 8, kind: input, shape index: {}]   ;;  %s3274_s9 = inlined_call_operand.vmem [shape: f32[64,32], index: 9, kind: input, shape index: {}]   ;;  %s3275_s10 = inlined_call_operand.vmem [shape: f32[1,32], index: 10, kind: input, shape index: {}]   ;;  %s3276_s11 = inlined_call_operand.vmem [shape: f32[1,32], index: 11, kind: input, shape index: {}]   ;;  %s3277_s12 = inlined_call_operand.vmem [shape: f32[1,32], index: 12, kind: input, shape index: {}]   ;;  %s3278_s13 = inlined_call_operand.vmem [shape: f32[1,32], index: 13, kind: input, shape index: {}]   ;;  %s3279_s14 = inlined_call_operand.vmem [shape: f32[1,32], index: 14, kind: input, shape index: {}]   ;;  %s3280_s15 = inlined_call_operand.hbm [shape: f32[2,8,32], index: 15, kind: output, shape index: {}]  }
   0x1   :  { %3287 = sst [smem:[#allocation23_spill]] %s3265_s0 }
   0x2   :  { %3288 = sst [smem:[#allocation24_spill]] %s3266_s1 }
   0x3   :  { %3289 = sst [smem:[#allocation25_spill]] %s3270_s5 }
   0x4   :  { %3290 = sst [smem:[#allocation26_spill]] %s3272_s7 }
   0x5   :  { %3291 = sst [smem:[#allocation27_spill]] %s3273_s8 }
   0x6   :  { %3292 = sst [smem:[#allocation28_spill]] %s3275_s10 }
   0x7   :  { %3293 = sst [smem:[#allocation29_spill]] %s3279_s14 }
   0x8   :  { %3294 = sst [smem:[#allocation30_spill]] %s3280_s15 }
   0x9   :  { %20 = vsyncpa [#allocation5], 0 }
   0xa   :  { %22 = vsyncpa [#allocation5 + $0x1], 0 }
   0xb   :  { %23 = vsyncpa [#allocation8], 0 }
   0xc   :  { %25 = vsyncpa [#allocation8 + $0x1], 0 }
   0xd   :  { %26 = vsyncpa [#allocation11], 0 }
   0xe   :  { %27 = vsyncpa [#allocation6], 0 }
   0xf   :  { %29 = vsyncpa [#allocation6 + $0x1], 0  ;;  %s2841_s18 = smov 0   ;;  %s2843_s19 = smov 0  }
  0x10   :  { %s2845_s20 = smov 0   ;;  %s2847_s21 = smov 0  }
  0x11   :  { %s2849_s22 = smov 0   ;;  %s2851_s23 = smov 0  }
  0x12 LB: > { %3295 = sst [smem:[#allocation18_spill]] %s2727_s18  ;;  %s2872_s24 = sadd.s32 4294967295, %s2747_s23   ;;  %s2747_s23 = sphi %s2851_s23, %s35_s23   ;;  %s2743_s22 = sphi %s2849_s22, %s3325_s22   ;;  %s2739_s21 = sphi %s2847_s21, %s3324_s21   ;;  %s2735_s20 = sphi %s2845_s20, %s3328_s20   ;;  %s2731_s19 = sphi %s2843_s19, %s3327_s19   ;;  %s2727_s18 = sphi %s2841_s18, %s3326_s18  }
  0x13   : > { %3296 = sst [smem:[#allocation19_spill]] %s2739_s21  ;;  %s2207_s25 = sadd.s32 4294967294, %s2747_s23  }
  0x14   : > { %3297 = sst [smem:[#allocation20_spill]] %s2743_s22  ;;  %p69_p0 = scmp.ne.s32.totalorder %s2731_s19, %s2727_s18 }
  0x15   : > { %p3284_p1 = scmp.eq.s32.totalorder %s2872_s24, 0  ;;  %p400_p3 = scmp.eq.s32.totalorder %s2207_s25, 1 }
  0x16   : > { %p2208_p5 = scmp.ge.s32.totalorder %s2747_s23, 1  ;;  %p407_p7 = scmp.lt.s32.totalorder %s2747_s23, 3 }
  0x17   : > { %p2881_p4 = por %p3284_p1, %p69_p0  ;;  %p2886_p6 = por %p400_p3, %p69_p0 }
  0x18   : > { %p2891_p8 = pnand %p2208_p5, %p407_p7  ;;  %s2749_s29 = smov [#allocation9]  }
  0x19   : > { %s3299_s27 = scalar_select %p2886_p6, 1, 0 }
  0x1a   : > { %s428_s30 = sshll.u32 %s2749_s29, 4  ;;  %p2444_p9 = pneg %p2891_p8  ;;  %s429_s30 = int_to_ptr.vmem [resolvable:$true] %s428_s30 }
  0x1b   : > { %3300 = sst [smem:[#allocation21_spill]] %s3299_s27  ;;  %s2750_s17 = smov [#allocation10]  }
  0x1c   : > { %p2900_p11 = pnand %p2444_p9, %p3284_p1  ;;  %s444_s25 = sshll.u32 %s2750_s17, 4  ;;  %s445_s25 = int_to_ptr.vmem [resolvable:$true] %s444_s25 }
  0x1d   : > { %s2558_s27 = scalar_lea.vmem %s429_s30, 512  ;;  %p2566_p5 = scmp.lt.s32.totalorder %s429_s30, %s429_s30 }
  0x1e   : > { %p2549_p12 = pneg %p2900_p11  ;;  %p2559_p13 = scmp.ne.s32.totalorder %s429_s30, %s2558_s27 }
  0x1f   : > { %p2567_p7 = scmp.lt.s32.totalorder %s2558_s27, %s2558_s27 }
  0x20   : > { %p2561_p0 = pnand %p2559_p13, %p2549_p12 }
  0x21   : > { %p2568_p10 = por %p2567_p7, %p2566_p5 }
  0x22   : > { %p2562_p3 = pneg %p2561_p0 }
  0x24   : > { %p2569_p9 = pnand %p2568_p10, %p2562_p3 }
  0x26   : > { %2572 = shalt.err (!%p2569_p9)
}
  0x27   : > { %s2751_s29 = smov 128   ;;  %s2752_s18 = smov 8  }
  0x28   : > { %s3303_s5 = sld [smem:[#allocation25_spill]]  ;;  %s2584_s10 = scalar_lea.vmem %s445_s25, 512 }
  0x29   : > { %p2585_p1 = scmp.ne.s32.totalorder %s445_s25, %s2584_s10  ;;  %p2592_p2 = scmp.lt.s32.totalorder %s445_s25, %s445_s25 }
  0x2a   : > { %p2593_p6 = scmp.lt.s32.totalorder %s2584_s10, %s2584_s10 }
  0x2b   : > { %p2587_p13 = pnand %p2585_p1, %p2549_p12 }
  0x2c   : > { %p2594_p5 = por %p2593_p6, %p2592_p2 }
  0x2d   : > { %p2588_p0 = pneg %p2587_p13 }
  0x2e   : > { %2447 = dma.hbm_to_vmem [thread:$0]  (!%p2900_p11), %s3303_s5, 512, %s429_s30, [#allocation8], %s2751_s29, %s2751_s29, %s2752_s18  }
  0x2f   : > { %p2595_p10 = pnand %p2594_p5, %p2588_p0 }
  0x31   : > { %2598 = shalt.err (!%p2595_p10)
}
  0x32   : > { %s3304_s7 = sld [smem:[#allocation26_spill]]  ;;  %s47_s10 = sadd.s32 1, %s2743_s22 }
  0x33   : > { %s56_s15 = sadd.s32 1, %s2735_s20  ;;  %p49_p1 = scmp.ge.s32.totalorder %s47_s10, 2 }
  0x34   : > { %p63_p2 = scmp.ne.s32.totalorder %s2735_s20, %s2731_s19  ;;  %p64_p6 = scmp.eq.s32.totalorder %s2747_s23, 0 }
  0x35   : > { %p2464_p12 = scmp.lt.s32.totalorder %s2747_s23, 2  ;;  %s3330_s10 = smov (%p49_p1, %s47_s10), 0 }
  0x36   : > { %3305 = sst [smem:[#allocation22_spill]] %s3330_s10  ;;  %p65_p3 = por %p64_p6, %p63_p2 }
  0x37   : > { %p3306_p7 = scmp.eq.s32.totalorder %s2872_s24, 1  ;;  %s51_s30 = ssub.s32 %s2743_s22, %s3330_s10 }
  0x38   : > { %2450 = dma.hbm_to_vmem [thread:$0]  (!%p2900_p11), %s3304_s7, 512, %s445_s25, [#allocation11], %s2751_s29, %s2751_s29, %s2752_s18  }
  0x39   : > { %p2932_p9 = por %p3306_p7, %p63_p2  ;;  %s479_s16 = sand.u32 1, %s2735_s20  }
  0x3a   : > { %p54_p13 = scmp.eq.s32.totalorder %s51_s30, 0  ;;  %s2212_s18 = sshll.u32 %s479_s16, 3 }
  0x3b   : > { %s2213_s25 = sshll.u32 %s2743_s22, 7  ;;  %s3308_s0 = sld [smem:[#allocation23_spill]] }
  0x3c   : > { %s2941_s29 = scalar_select %p54_p13, %s2735_s20, %s56_s15  }
  0x3d   : > { %s483_s7 = scalar_lea.vmem [#allocation4], %s2212_s18  ;;  %p2948_p11 = pnand %p2464_p12, %p65_p3 }
  0x3e   : > { %s491_s21 = sshll.u32 %s483_s7, 4  ;;  %s3310_s1 = sld [smem:[#allocation24_spill]]  ;;  %s492_s21 = int_to_ptr.vmem [resolvable:$true] %s491_s21 }
  0x3f   : > { %s480_s15 = scalar_lea.sflag [#allocation5], %s479_s16  ;;  %p2601_p0 = pneg %p2948_p11 }
  0x40   : > { %s2612_s17 = scalar_lea.vmem %s492_s21, 128  ;;  %s2753_s7 = smov [#allocation4]  }
  0x41   : > { %s489_s5 = scalar_lea.hbm %s3308_s0, %s2213_s25  ;;  %p2613_p5 = scmp.ne.s32.totalorder %s492_s21, %s2612_s17 }
  0x42   : > { %s2617_s27 = sshll.u32 %s2753_s7, 4  ;;  %s2618_s27 = int_to_ptr.vmem [resolvable:$false] %s2617_s27 }
  0x43   : > { %p2615_p10 = pnand %p2613_p5, %p2601_p0  ;;  %s2619_s0 = scalar_lea.vmem %s2618_s27, 256 }
  0x44   : > { %s2955_s22 = scalar_lea.hbm %s3310_s1, %s2213_s25  ;;  %p2620_p2 = scmp.lt.s32.totalorder %s492_s21, %s2618_s27 }
  0x45   : > { %p2616_p1 = pneg %p2615_p10  ;;  %p2621_p6 = scmp.lt.s32.totalorder %s2619_s0, %s2612_s17 }
  0x47   : > { %p2622_p12 = por %p2621_p6, %p2620_p2 }
  0x49   : > { %p2623_p3 = pnand %p2622_p12, %p2616_p1 }
  0x4b   : > { %2626 = shalt.err (!%p2623_p3)
}
  0x4c   : > { %2454 = dma.hbm_to_vmem [thread:$0]  (!%p2948_p11), %s489_s5, 128, %s492_s21, %s480_s15  }
  0x4d   : > { %s498_s10 = sand.u32 1, %s2747_s23   ;;  %s502_s16 = scalar_lea.vmem [#allocation7], %s2212_s18 }
  0x4e   : > { %s509_s25 = sshll.u32 %s502_s16, 4  ;;  %s499_s30 = scalar_lea.sflag [#allocation8], %s498_s10  ;;  %s510_s25 = int_to_ptr.vmem [resolvable:$true] %s509_s25 }
  0x4f   : > { %s2640_s1 = scalar_lea.vmem %s510_s25, 128  ;;  %s2754_s0 = smov [#allocation7]  }
  0x50   : > { %p2641_p7 = scmp.ne.s32.totalorder %s510_s25, %s2640_s1  ;;  %s2645_s17 = sshll.u32 %s2754_s0, 4  ;;  %s2646_s17 = int_to_ptr.vmem [resolvable:$false] %s2645_s17 }
  0x51   : > { %s2647_s7 = scalar_lea.vmem %s2646_s17, 256  ;;  %p2648_p10 = scmp.lt.s32.totalorder %s510_s25, %s2646_s17 }
  0x52   : > { %p2643_p13 = pnand %p2641_p7, %p2601_p0  ;;  %p2649_p1 = scmp.lt.s32.totalorder %s2647_s7, %s2640_s1 }
  0x54   : > { %p2644_p5 = pneg %p2643_p13  ;;  %p2650_p2 = por %p2649_p1, %p2648_p10 }
  0x56   : > { %p2651_p6 = pnand %p2650_p2, %p2644_p5 }
  0x58   : > { %2654 = shalt.err (!%p2651_p6)
}
  0x59   : > { %2457 = dma.hbm_to_vmem [thread:$0]  (!%p2948_p11), %s2955_s22, 128, %s510_s25, %s499_s30  }
  0x5a   : > { %518 = sbr.rel (%p2891_p8) target bundleno = 3563 (0xdeb), region = 80  ;;  %s2974_s5 = sand.u32 (!%p2891_p8), 1, %s2731_s19  }
  0x5b   : > { %s2977_s21 = sshll.u32 (!%p2891_p8), %s2974_s5, 3  ;;  %s521_s1 = scalar_lea.sflag (!%p2891_p8), [#allocation5], %s2974_s5 }
  0x5c   : > { %s524_s18 = scalar_lea.vmem (!%p2891_p8), [#allocation4], %s2977_s21 }
  0x5f   : > { %2706 = dma.done.wait (%p2881_p4), %s521_s1, 128  }
  0x60   : > { %2708 = vsyncadd (%p2881_p4), %s521_s1, 4294967168  ;;  %s529_s14 = sand.u32 1, %s2872_s24   ;;  %s533_s28 = scalar_lea.vmem [#allocation7], %s2977_s21 }
  0x61   : > { %s530_s22 = scalar_lea.sflag [#allocation8], %s529_s14 }
  0x62   : > { %2710 = dma.done.wait (%p2881_p4), %s530_s22, 128  }
  0x63   : > { %2712 = vsyncadd (%p2881_p4), %s530_s22, 4294967168  ;;  %p3311_p8 = scmp.eq.s32.totalorder %s2872_s24, 0 }
  0x65   : > { %2714 = dma.done.wait (%p3311_p8), [#allocation8], 512   ;;  %p3312_p11 = pmov %p3311_p8 }
  0x66   : > { %p3313_p0 = pmov %p3311_p8 }
  0x67   : > { %2716 = vsyncadd (%p3312_p11), [#allocation8], 4294966784 }
  0x68   : > { %2718 = dma.done.wait (%p3313_p0), [#allocation11], 512   ;;  %p3314_p12 = pmov %p3313_p0 }
  0x69   : > { %vm600_vm0 = vcmask 261120   ;;  %v599_v0 = vld [vmem:[%s533_s28] sm:$0xff]  ;;  %v2999_v1 = vld [vmem:[%s524_s18] sm:$0xff]  ;;  %v2755_v16 = vmov 0.0   ;;  %vm2756_vm1 = vmmov 0   ;;  %vm891_vm2 = vcmask 64512  }
  0x6a   : > { %2720 = vsyncadd (%p3314_p12), [#allocation11], 4294966784  ;;  %v601_v2 = vsel %vm600_vm0, %v599_v0, 0.0  ;;  %v784_v3 = vsel %vm600_vm0, %v2999_v1, 0.0  ;;  %v632_v14 = vld [vmem:[%s3268_s3 + $0x18] sm:$0xff]  ;;  %2307 = vmatprep.subr.mxu0 %v2755_v16  ;;  %2318 = vmatprep.subr.mxu1 %v2755_v16  ;;  %v631_v17 = vld [vmem:[%s3268_s3 + $0x10] sm:$0xff] }
  0x6b   : > { %602 = vadd.xlane.f32.xlu0 %v601_v2  ;;  %v710_v15 = vld [vmem:[%s3269_s4 + $0x18] sm:$0xff]  ;;  %v709_v18 = vld [vmem:[%s3269_s4 + $0x10] sm:$0xff]  ;;  %2308 = vmatpush3.msra.mxu0 %v632_v14  ;;  %v630_v19 = vld [vmem:[%s3268_s3 + $0x8] sm:$0xff]  ;;  %s2757_s18 = smov 120   ;;  %s2758_s14 = smov 112   ;;  %vm1985_vm3 = vcmask 523264  }
  0x6c   : > { %2319 = vmatpush3.msra.mxu1 %v710_v15  ;;  %2309 = vmatprep.subr.mxu0 %v2755_v16  ;;  %v708_v20 = vld [vmem:[%s3269_s4 + $0x8] sm:$0xff]  ;;  %v629_v21 = vld [vmem:[%s3268_s3] sm:$0xff]  ;;  %v815_v37 = vld [vmem:[%s3267_s2 + $0x18] sm:$0xff]  ;;  %s2759_s22 = smov 104   ;;  %s3315_s28 = sld [smem:[#allocation29_spill]] }
  0x6d   : > { %2320 = vmatprep.subr.mxu1 %v2755_v16  ;;  %2310 = vmatpush3.msra.mxu0 %v631_v17  ;;  %v707_v22 = vld [vmem:[%s3269_s4] sm:$0xff]  ;;  %v814_v38 = vld [vmem:[%s3267_s2 + $0x10] sm:$0xff]  ;;  %v813_v40 = vld [vmem:[%s3267_s2 + $0x8] sm:$0xff]  ;;  %s3316_s15 = sld [smem:[#allocation19_spill]]  ;;  %s2070_s16 = scalar_lea.sflag [#allocation6], %s2974_s5 }
  0x6e   : > { %2321 = vmatpush3.msra.mxu1 %v709_v18  ;;  %2311 = vmatprep.subr.mxu0 %v2755_v16  ;;  %v2252_v30 = vld [vmem:[%s3276_s11] ss:$0 sm:$0xff]  ;;  %v1054_v17 = vld [vmem:[#allocation9] sm:$0xff]  ;;  %s3317_s17 = sld [smem:[#allocation27_spill]] }
  0x6f   : > { %785 = vadd.xlane.f32.xlu0 %v784_v3  ;;  %2322 = vmatprep.subr.mxu1 %v2755_v16  ;;  %v2253_v32 = vld [vmem:[%s3277_s12] ss:$0 sm:$0xff]  ;;  %s3319_s27 = sld [smem:[#allocation30_spill]] }
  0x70   : > { %2312 = vmatpush3.msra.mxu0 %v630_v19  ;;  %2323 = vmatpush3.msra.mxu1 %v708_v20  ;;  %v812_v41 = vld [vmem:[%s3267_s2] sm:$0xff] }
  0x71   : > { %2313 = vmatprep.subr.mxu0 %v2755_v16  ;;  %2324 = vmatprep.subr.mxu1 %v2755_v16 }
  0x72   : > { %2314 = vmatpush3.msra.mxu0 %v629_v21  ;;  %2315 = vmatprep.mubr.msk.f32.mxu0 %vm2756_vm1, %v2755_v16 }
  0x73   : > { %2325 = vmatpush3.msra.mxu1 %v707_v22  ;;  %2326 = vmatprep.mubr.msk.f32.mxu1 %vm2756_vm1, %v2755_v16 }
  0x74   : > { %2329 = vmatprep.subr.mxu0 %v2755_v16  ;;  %2345 = vmatprep.subr.mxu1 %v2755_v16 }
  0xf4   : > { %v603_v4 = vpop.xlane.xlu0 %602 }
  0xf5   : > { %v605_v5 = vmul.f32 0.03125, %v603_v4 }
  0xf7   : > { %v606_v6 = vsub.f32 %v599_v0, %v605_v5 }
  0xf8   : > { %v786_v7 = vpop.xlane.xlu0 %785 }
  0xf9   : > { %v788_v8 = vmul.f32 0.03125, %v786_v7  ;;  %v607_v9 = vmul.f32 %v606_v6, %v606_v6 }
  0xfb   : > { %v789_v10 = vsub.f32 %v2999_v1, %v788_v8  ;;  %v608_v11 = vsel %vm600_vm0, %v607_v9, 0.0 }
  0xfc   : > { %609 = vadd.xlane.f32.xlu1 %v608_v11 }
  0xfd   : > { %v790_v12 = vmul.f32 %v789_v10, %v789_v10 }
  0xff   : > { %v791_v13 = vsel %vm600_vm0, %v790_v12, 0.0  ;;  %v1223_v12 = vld [vmem:[#allocation9 + $0x8] sm:$0xff] }
 0x100   : > { %792 = vadd.xlane.f32.xlu1 %v791_v13 }
 0x185   : > { %v610_v23 = vpop.xlane.xlu1 %609 }
 0x186   : > { %v611_v24 = vmul.f32 0.03125, %v610_v23 }
 0x188   : > { %v612_v25 = vadd.f32 1e-05, %v611_v24 }
 0x189   : > { %v793_v26 = vpop.xlane.xlu1 %792 }
 0x18a   : > { %2525 = vrsqrt.f32 %v612_v25  ;;  %v794_v27 = vmul.f32 0.03125, %v793_v26 }
 0x18c   : > { %v795_v28 = vadd.f32 1e-05, %v794_v27 }
 0x18e   : > { %2527 = vrsqrt.f32 %v795_v28 }
 0x197   : > { %v2526_v29 = vpop.eup %2525 }
 0x198   : > { %v614_v31 = vmul.f32 %v2526_v29, %v606_v6 }
 0x19a   : > { %v621_v33 = vmul.f32 %v2252_v30, %v614_v31 }
 0x19b   : > { %v2528_v34 = vpop.eup %2527 }
 0x19c   : > { %v628_v35 = vadd.f32 %v2253_v32, %v621_v33  ;;  %v797_v36 = vmul.f32 %v2528_v34, %v789_v10 }
 0x19e   : > { %2316 = vmatmul.mubr.msk.f32.vlgmr.msra.gmra.mxu0 %vm600_vm0, %v628_v35  ;;  %2327 = vmatmul.mubr.msk.f32.vlgmr.msra.gmra.mxu1 %vm600_vm0, %v628_v35  ;;  %v804_v39 = vmul.f32 %v2252_v30, %v797_v36 }
 0x19f   : > { %2330 = vmatpush3.msra.mxu0 %v815_v37  ;;  %2337 = vmatprep.mubr.msk.f32.mxu0 %vm2756_vm1, %v2755_v16 }
 0x1a0   : > { %2331 = vmatprep.subr.mxu0 %v2755_v16  ;;  %2347 = vmatprep.mubr.msk.f32.mxu1 %vm2756_vm1, %v2755_v16  ;;  %v811_v42 = vadd.f32 %v2253_v32, %v804_v39 }
 0x1a1   : > { %2332 = vmatpush3.msra.mxu0 %v814_v38 }
 0x1a2   : > { %2333 = vmatprep.subr.mxu0 %v2755_v16 }
 0x1a3   : > { %2334 = vmatpush3.msra.mxu0 %v813_v40 }
 0x1a4   : > { %2335 = vmatprep.subr.mxu0 %v2755_v16 }
 0x1a5   : > { %2336 = vmatpush3.msra.mxu0 %v812_v41 }
 0x1a6   : > { %2338 = vmatmul.mubr.msk.f32.vlgmr.msra.gmra.mxu0 %vm600_vm0, %v811_v42  ;;  %2340 = vmatprep.subr.mxu0 %v2755_v16 }
 0x1a7   : > { %2342 = vmatprep.mubr.msk.f32.mxu0 %vm2756_vm1, %v2755_v16 }
 0x25e   : > { %v702_v43 = vpop.f32.mrf.mxu0  ;;  %v777_v44 = vpop.f32.mrf.mxu1 }
 0x25f   : > { %706 = vst.msk [vmem:[#allocation2] sm:$0xff] %vm600_vm0, %v702_v43  ;;  %781 = vst.msk [vmem:[#allocation3] sm:$0xff] %vm600_vm0, %v777_v44  ;;  %v1537_v43 = vld [vmem:[#allocation9 + $0x10] sm:$0xff] }
 0x260   : > { %v2317_v45 = vpop.f32.mrf.mxu0  ;;  %v2328_v46 = vpop.f32.mrf.mxu1 }
 0x266   : > { %v3078_v47 = vpop.f32.mrf.mxu0  ;;  %v3080_v48 = vld [vmem:[#allocation3] sm:$0xff]  ;;  %v3082_v49 = vld [vmem:[#allocation2] sm:$0xff] }
 0x267   : > { %1055 = vrot.lane.b32.xlu1 %v3078_v47, %s2757_s18  ;;  %2346 = vmatpush3.msra.mxu1 %v3080_v48 }
 0x268   : > { %1057 = vrot.lane.b32.xlu0 %v3082_v49, %s2757_s18  ;;  %v2339_v50 = vpop.f32.mrf.mxu0  ;;  %2341 = vmatpush3.xpose.msk.msra.mxu0 %vm891_vm2, %v3082_v49 }
 0x269   : > { %2350 = vmatprep.subr.mxu0 %v2755_v16  ;;  %2355 = vmatprep.subr.mxu1 %v2755_v16 }
 0x26b   : > { %2343 = vmatmul.mubr.msk.f32.vlgmr.msra.gmra.mxu0 %vm891_vm2, %v3078_v47 }
 0x26c   : > { %2352 = vmatprep.mubr.msk.f32.mxu0 %vm2756_vm1, %v2755_v16 }
 0x2d9   : > { %v1056_v52 = vpop.permute.xlu1 %1055 }
 0x2da   : > { %v1058_v51 = vpop.permute.xlu0 %1057 }
 0x2db   : > { %2351 = vmatpush3.xpose.msk.msra.mxu0 %vm891_vm2, %v1058_v51 }
 0x2dc   : > { %2360 = vmatprep.subr.mxu0 %v2755_v16 }
 0x2de   : > { %2353 = vmatmul.mubr.msk.f32.vlgmr.msra.gmra.mxu0 %vm891_vm2, %v1056_v52 }
 0x2df   : > { %2362 = vmatprep.mubr.msk.f32.mxu0 %vm2756_vm1, %v2755_v16  ;;  %2361 = vmatpush3.msra.mxu0 %v1223_v12 }
 0x2e0   : > { %2370 = vmatprep.subr.mxu0 %v2755_v16 }
 0x32b   : > { %v964_v53 = vpop.f32.mrf.mxu0 }
 0x32c   : > { %v968_v54 = vmul.f32 0.35355338, %v964_v53 }
 0x32d   : > { %v2344_v55 = vpop.f32.mrf.mxu0 }
 0x32e   : > { %v969_v56 = vsel %vm891_vm2, %v968_v54, -inf }
 0x32f   : > { %970 = vmax.xlane.f32.xlu1 %v969_v56 }
 0x39e   : > { %v1129_v57 = vpop.f32.mrf.mxu0 }
 0x39f   : > { %v1133_v58 = vmul.f32 0.35355338, %v1129_v57  ;;  %v1779_v57 = vld [vmem:[#allocation9 + $0x18] sm:$0xff] }
 0x3a0   : > { %v2354_v59 = vpop.f32.mrf.mxu0 }
 0x3a1   : > { %v1134_v60 = vsel %vm891_vm2, %v1133_v58, -inf }
 0x3a2   : > { %1135 = vmax.xlane.f32.xlu0 %v1134_v60 }
 0x3b8   : > { %v971_v61 = vpop.xlane.xlu1 %970 }
 0x3b9   : > { %v972_v62 = vsub.f32 %v968_v54, %v971_v61 }
 0x3bb   : > { %v973_v63 = vmul.f32 1.442695, %v972_v62 }
 0x3bd   : > { %2529 = vpow2.f32 %v973_v63 }
 0x3ca   : > { %v2530_v0 = vpop.eup %2529 }
 0x3cb   : > { %v975_v2 = vsel %vm891_vm2, %v2530_v0, 0.0 }
 0x3cc   : > { %976 = vadd.xlane.f32.xlu0 %v975_v2 }
 0x3e2   : > { %1147 = vrot.lane.b32.xlu0 %v3080_v48, %s2757_s18  ;;  %s3318_s18 = sld [smem:[#allocation28_spill]] }
 0x42b   : > { %v1136_v3 = vpop.xlane.xlu0 %1135 }
 0x42c   : > { %v1137_v4 = vsub.f32 %v1133_v58, %v1136_v3 }
 0x42e   : > { %v1138_v5 = vmul.f32 1.442695, %v1137_v4 }
 0x430   : > { %2531 = vpow2.f32 %v1138_v5  ;;  %v2241_v5 = vld [vmem:[%s3271_s6] ss:$0 sm:$0xff] }
 0x43d   : > { %v2532_v6 = vpop.eup %2531 }
 0x43e   : > { %v1140_v7 = vsel %vm891_vm2, %v2532_v6, 0.0 }
 0x43f   : > { %1141 = vadd.xlane.f32.xlu1 %v1140_v7 }
 0x450   : > { %1372 = vrot.lane.b32.xlu1 %v3082_v49, %s2758_s14 }
 0x454   : > { %1370 = vrot.lane.b32.xlu1 %v3078_v47, %s2758_s14 }
 0x455   : > { %v977_v8 = vpop.xlane.xlu0 %976 }
 0x456   : > { %2533 = vrcp.f32 %v977_v8 }
 0x459   : > { %v1148_v11 = vpop.permute.xlu0 %1147 }
 0x463   : > { %v2534_v9 = vpop.eup %2533 }
 0x464   : > { %v980_v10 = vmul.f32 %v2534_v9, %v2530_v0 }
 0x466   : > { %2348 = vmatmul.mubr.msk.f32.vlgmr.msra.gmra.mxu1 %vm891_vm2, %v980_v10 }
 0x467   : > { %2356 = vmatpush3.msra.mxu1 %v1148_v11  ;;  %2357 = vmatprep.mubr.msk.f32.mxu1 %vm2756_vm1, %v2755_v16 }
 0x468   : > { %2365 = vmatprep.subr.mxu1 %v2755_v16 }
 0x4c8   : > { %v1142_v13 = vpop.xlane.xlu1 %1141 }
 0x4c9   : > { %2535 = vrcp.f32 %v1142_v13 }
 0x4cc   : > { %v1373_v20 = vpop.permute.xlu1 %1372 }
 0x4d0   : > { %v1371_v23 = vpop.permute.xlu1 %1370 }
 0x4d6   : > { %v2536_v14 = vpop.eup %2535 }
 0x4d7   : > { %v1145_v15 = vmul.f32 %v2536_v14, %v2532_v6 }
 0x4d9   : > { %2358 = vmatmul.mubr.msk.f32.vlgmr.msra.gmra.mxu1 %vm891_vm2, %v1145_v15  ;;  %v1895_v15 = vld [vmem:[#allocation10 + $0x18] sm:$0xff] }
 0x4da   : > { %2366 = vmatpush3.msra.mxu1 %v1054_v17  ;;  %2367 = vmatprep.mubr.msk.f32.mxu1 %vm2756_vm1, %v2755_v16  ;;  %v1894_v17 = vld [vmem:[#allocation10 + $0x10] sm:$0xff] }
 0x4db   : > { %2375 = vmatprep.subr.mxu1 %v2755_v16 }
 0x526   : > { %v1050_v18 = vpop.f32.mrf.mxu1 }
 0x527   : > { %2368 = vmatmul.mubr.msk.f32.vlgmr.msra.gmra.mxu1 %vm891_vm2, %v1050_v18  ;;  %v1892_v18 = vld [vmem:[#allocation10] sm:$0xff] }
 0x528   : > { %v2349_v19 = vpop.f32.mrf.mxu1  ;;  %2377 = vmatprep.mubr.msk.f32.mxu1 %vm2756_vm1, %v2755_v16 }
 0x529   : > { %v1904_v19 = vld [vmem:[%s3274_s9 + $0x38] sm:$0xff] }
 0x599   : > { %v1219_v21 = vpop.f32.mrf.mxu1 }
 0x59a   : > { %2363 = vmatmul.mubr.msk.f32.vlgmr.msra.gmra.mxu0 %vm891_vm2, %v1219_v21  ;;  %v1902_v21 = vld [vmem:[%s3274_s9 + $0x28] sm:$0xff] }
 0x59b   : > { %2371 = vmatpush3.xpose.msk.msra.mxu0 %vm891_vm2, %v1373_v20  ;;  %v2359_v22 = vpop.f32.mrf.mxu1  ;;  %2372 = vmatprep.mubr.msk.f32.mxu0 %vm2756_vm1, %v2755_v16  ;;  %v1903_v20 = vld [vmem:[%s3274_s9 + $0x30] sm:$0xff] }
 0x59c   : > { %2380 = vmatprep.subr.mxu0 %v2755_v16  ;;  %v1901_v22 = vld [vmem:[%s3274_s9 + $0x20] sm:$0xff] }
 0x59e   : > { %2373 = vmatmul.mubr.msk.f32.vlgmr.msra.gmra.mxu0 %vm891_vm2, %v1371_v23  ;;  %v1900_v23 = vld [vmem:[%s3274_s9 + $0x18] sm:$0xff] }
 0x59f   : > { %2382 = vmatprep.mubr.msk.f32.mxu0 %vm2756_vm1, %v2755_v16  ;;  %2381 = vmatpush3.msra.mxu0 %v1537_v43 }
 0x5a0   : > { %2390 = vmatprep.subr.mxu0 %v2755_v16 }
 0x5e7   : > { %v1366_v24 = vpop.f32.mrf.mxu1 }
 0x5e9   : > { %v2369_v25 = vpop.f32.mrf.mxu1 }
 0x65a   : > { %v1293_v26 = vpop.f32.mrf.mxu0 }
 0x65b   : > { %v1367_v58 = vadd.f32 %v1366_v24, %v1293_v26 }
 0x65c   : > { %v2364_v27 = vpop.f32.mrf.mxu0 }
 0x65e   : > { %v1444_v28 = vpop.f32.mrf.mxu0 }
 0x65f   : > { %v1448_v29 = vmul.f32 0.35355338, %v1444_v28  ;;  %v2242_v28 = vld [vmem:[%s3278_s13] ss:$0 sm:$0xff] }
 0x660   : > { %v2374_v30 = vpop.f32.mrf.mxu0 }
 0x661   : > { %v1449_v31 = vsel %vm891_vm2, %v1448_v29, -inf  ;;  %v2243_v30 = vld [vmem:[%s3315_s28] ss:$0 sm:$0xff] }
 0x662   : > { %1450 = vmax.xlane.f32.xlu1 %v1449_v31 }
 0x673   : > { %1614 = vrot.lane.b32.xlu1 %v3082_v49, %s2759_s22 }
 0x677   : > { %1612 = vrot.lane.b32.xlu1 %v3078_v47, %s2759_s22 }
 0x6eb   : > { %v1451_v32 = vpop.xlane.xlu1 %1450 }
 0x6ec   : > { %v1452_v33 = vsub.f32 %v1448_v29, %v1451_v32 }
 0x6ee   : > { %v1453_v34 = vmul.f32 1.442695, %v1452_v33  ;;  %v1899_v33 = vld [vmem:[%s3274_s9 + $0x10] sm:$0xff] }
 0x6ef   : > { %v1615_v40 = vpop.permute.xlu1 %1614 }
 0x6f0   : > { %2537 = vpow2.f32 %v1453_v34  ;;  %v1898_v34 = vld [vmem:[%s3274_s9 + $0x8] sm:$0xff] }
 0x6f3   : > { %v1613_v42 = vpop.permute.xlu1 %1612 }
 0x6fd   : > { %v2538_v35 = vpop.eup %2537 }
 0x6fe   : > { %v1455_v36 = vsel %vm891_vm2, %v2538_v35, 0.0 }
 0x6ff   : > { %1456 = vadd.xlane.f32.xlu0 %v1455_v36  ;;  %v2244_v36 = vld [vmem:[%s3317_s17] ss:$0 sm:$0xff] }
 0x715   : > { %1461 = vrot.lane.b32.xlu0 %v3080_v48, %s2758_s14  ;;  %s2249_s14 = sshll.u32 %s3316_s15, 7  ;;  %s2760_s15 = smov [#allocation12]  }
 0x716   : > { %s2082_s10 = scalar_lea.hbm %s3319_s27, %s2249_s14 }
 0x788   : > { %v1457_v37 = vpop.xlane.xlu0 %1456 }
 0x789   : > { %2539 = vrcp.f32 %v1457_v37 }
 0x78c   : > { %v1462_v38 = vpop.permute.xlu0 %1461 }
 0x78d   : > { %2376 = vmatpush3.msra.mxu1 %v1462_v38 }
 0x78e   : > { %2385 = vmatprep.subr.mxu1 %v2755_v16 }
 0x796   : > { %v2540_v39 = vpop.eup %2539 }
 0x797   : > { %v1460_v41 = vmul.f32 %v2540_v39, %v2538_v35  ;;  %v1897_v35 = vld [vmem:[%s3274_s9] sm:$0xff] }
 0x799   : > { %2378 = vmatmul.mubr.msk.f32.vlgmr.msra.gmra.mxu1 %vm891_vm2, %v1460_v41 }
 0x79a   : > { %2386 = vmatpush3.xpose.msk.msra.mxu1 %vm891_vm2, %v1615_v40  ;;  %2387 = vmatprep.mubr.msk.f32.mxu1 %vm2756_vm1, %v2755_v16 }
 0x79b   : > { %2395 = vmatprep.subr.mxu1 %v2755_v16 }
 0x79d   : > { %2388 = vmatmul.mubr.msk.f32.vlgmr.msra.gmra.mxu1 %vm891_vm2, %v1613_v42  ;;  %v2247_v42 = vld [vmem:[%s3318_s18] ss:$0 sm:$0xff] }
 0x79e   : > { %2397 = vmatprep.mubr.msk.f32.mxu1 %vm2756_vm1, %v2755_v16  ;;  %2396 = vmatpush3.msra.mxu1 %v1779_v57 }
 0x79f   : > { %2411 = vmatprep.subr.mxu1 %v2755_v16 }
 0x859   : > { %v1533_v44 = vpop.f32.mrf.mxu1 }
 0x85a   : > { %2383 = vmatmul.mubr.msk.f32.vlgmr.msra.gmra.mxu0 %vm891_vm2, %v1533_v44 }
 0x85b   : > { %v2379_v45 = vpop.f32.mrf.mxu1  ;;  %2392 = vmatprep.mubr.msk.f32.mxu0 %vm2756_vm1, %v2755_v16 }
 0x85d   : > { %v1686_v46 = vpop.f32.mrf.mxu1 }
 0x85e   : > { %v1690_v47 = vmul.f32 0.35355338, %v1686_v46 }
 0x85f   : > { %v2389_v49 = vpop.f32.mrf.mxu1 }
 0x860   : > { %v1691_v50 = vsel %vm891_vm2, %v1690_v47, -inf }
 0x861   : > { %1692 = vmax.xlane.f32.xlu0 %v1691_v50 }
 0x877   : > { %1703 = vrot.lane.b32.xlu0 %v3080_v48, %s2759_s22  ;;  %s592_s22 = scalar_lea.vmem [#allocation12], %s2977_s21  ;;  %s2659_s21 = sshll.u32 %s2760_s15, 4  ;;  %s2660_s21 = int_to_ptr.vmem [resolvable:$false] %s2659_s21 }
 0x878   : > { %s2084_s28 = sshll.u32 %s592_s22, 4  ;;  %s2661_s30 = scalar_lea.vmem %s2660_s21, 256  ;;  %s2085_s28 = int_to_ptr.vmem [resolvable:$true] %s2084_s28 }
 0x879   : > { %s2655_s25 = scalar_lea.vmem %s2085_s28, 128  ;;  %p2662_p13 = scmp.lt.s32.totalorder %s2085_s28, %s2660_s21 }
 0x87a   : > { %p2656_p4 = scmp.ne.s32.totalorder %s2085_s28, %s2655_s25  ;;  %p2663_p5 = scmp.lt.s32.totalorder %s2661_s30, %s2655_s25 }
 0x87c   : > { %p2657_p3 = pnand %p2656_p4, %p2932_p9  ;;  %p2664_p10 = por %p2663_p5, %p2662_p13 }
 0x87e   : > { %p2658_p7 = pneg %p2657_p3 }
 0x880   : > { %p2665_p1 = pnand %p2664_p10, %p2658_p7 }
 0x8ea   : > { %v1693_v51 = vpop.xlane.xlu0 %1692 }
 0x8eb   : > { %v1694_v52 = vsub.f32 %v1690_v47, %v1693_v51 }
 0x8ed   : > { %v1695_v53 = vmul.f32 1.442695, %v1694_v52 }
 0x8ee   : > { %v1704_v54 = vpop.permute.xlu0 %1703 }
 0x8ef   : > { %2541 = vpow2.f32 %v1695_v53  ;;  %2391 = vmatpush3.msra.mxu0 %v1704_v54 }
 0x8f0   : > { %2400 = vmatprep.subr.mxu0 %v2755_v16 }
 0x8fc   : > { %v2542_v55 = vpop.eup %2541 }
 0x8fd   : > { %v1697_v56 = vsel %vm891_vm2, %v2542_v55, 0.0 }
 0x8fe   : > { %1698 = vadd.xlane.f32.xlu1 %v1697_v56 }
 0x91a   : > { %v1607_v59 = vpop.f32.mrf.mxu0 }
 0x91b   : > { %v1611_v60 = vadd.f32 %v1607_v59, %v1367_v58 }
 0x91c   : > { %v2384_v48 = vpop.f32.mrf.mxu0 }
 0x987   : > { %v1699_v61 = vpop.xlane.xlu1 %1698 }
 0x988   : > { %2543 = vrcp.f32 %v1699_v61 }
 0x995   : > { %v2544_v62 = vpop.eup %2543 }
 0x996   : > { %v1702_v63 = vmul.f32 %v2544_v62, %v2542_v55 }
 0x998   : > { %2393 = vmatmul.mubr.msk.f32.vlgmr.msra.gmra.mxu0 %vm891_vm2, %v1702_v63 }
 0x999   : > { %2408 = vmatprep.mubr.msk.f32.mxu0 %vm2756_vm1, %v2755_v16  ;;  %2401 = vmatpush3.msra.mxu0 %v1895_v15 }
 0x99a   : > { %2402 = vmatprep.subr.mxu0 %v2755_v16 }
 0x99b   : > { %2403 = vmatpush3.msra.mxu0 %v1894_v17 }
 0x99c   : > { %2404 = vmatprep.subr.mxu0 %v2755_v16 }
 0xa58   : > { %v1775_v0 = vpop.f32.mrf.mxu0 }
 0xa59   : > { %2398 = vmatmul.mubr.msk.f32.vlgmr.msra.gmra.mxu1 %vm891_vm2, %v1775_v0 }
 0xa5a   : > { %v2394_v2 = vpop.f32.mrf.mxu0  ;;  %2427 = vmatprep.mubr.msk.f32.mxu1 %vm2756_vm1, %v2755_v16  ;;  %2412 = vmatpush3.msra.mxu1 %v1904_v19 }
 0xa5b   : > { %2413 = vmatprep.subr.mxu1 %v2755_v16 }
 0xa5c   : > { %2414 = vmatpush3.msra.mxu1 %v1903_v20 }
 0xa5d   : > { %2415 = vmatprep.subr.mxu1 %v2755_v16 }
 0xa5e   : > { %2416 = vmatpush3.msra.mxu1 %v1902_v21 }
 0xa5f   : > { %2417 = vmatprep.subr.mxu1 %v2755_v16 }
 0xa60   : > { %2418 = vmatpush3.msra.mxu1 %v1901_v22 }
 0xa61   : > { %2419 = vmatprep.subr.mxu1 %v2755_v16 }
 0xa62   : > { %2420 = vmatpush3.msra.mxu1 %v1900_v23 }
 0xa63   : > { %2421 = vmatprep.subr.mxu1 %v2755_v16 }
 0xa64   : > { %2422 = vmatpush3.msra.mxu1 %v1899_v33 }
 0xa65   : > { %2423 = vmatprep.subr.mxu1 %v2755_v16 }
 0xa66   : > { %2424 = vmatpush3.msra.mxu1 %v1898_v34 }
 0xa67   : > { %2425 = vmatprep.subr.mxu1 %v2755_v16 }
 0xa68   : > { %2426 = vmatpush3.msra.mxu1 %v1897_v35 }
 0xb19   : > { %v1849_v3 = vpop.f32.mrf.mxu1 }
 0xb1a   : > { %v1853_v4 = vadd.f32 %v1849_v3, %v1611_v60 }
 0xb1b   : > { %v2399_v6 = vpop.f32.mrf.mxu1 }
 0xb1c   : > { %v1854_v7 = vadd.f32 %v1853_v4, %v2999_v1  ;;  %v1893_v1 = vld [vmem:[#allocation10 + $0x8] sm:$0xff] }
 0xb1d   : > { %2405 = vmatpush3.msra.mxu0 %v1893_v1 }
 0xb1e   : > { %v3169_v8 = vadd.f32 %v2241_v5, %v1854_v7  ;;  %2406 = vmatprep.subr.mxu0 %v2755_v16 }
 0xb1f   : > { %2407 = vmatpush3.msra.mxu0 %v1892_v18 }
 0xb20   : > { %v1865_v9 = vsel %vm600_vm0, %v3169_v8, 0.0 }
 0xb21   : > { %1866 = vadd.xlane.f32.xlu1 %v1865_v9 }
 0xbaa   : > { %v1867_v10 = vpop.xlane.xlu1 %1866 }
 0xbab   : > { %v1868_v11 = vmul.f32 0.03125, %v1867_v10 }
 0xbad   : > { %v1869_v12 = vsub.f32 %v3169_v8, %v1868_v11 }
 0xbaf   : > { %v1870_v13 = vmul.f32 %v1869_v12, %v1869_v12 }
 0xbb1   : > { %v1871_v14 = vsel %vm600_vm0, %v1870_v13, 0.0 }
 0xbb2   : > { %1872 = vadd.xlane.f32.xlu1 %v1871_v14 }
 0xc3b   : > { %v1873_v24 = vpop.xlane.xlu1 %1872 }
 0xc3c   : > { %v1874_v25 = vmul.f32 0.03125, %v1873_v24 }
 0xc3e   : > { %v1875_v26 = vadd.f32 1e-05, %v1874_v25 }
 0xc40   : > { %2545 = vrsqrt.f32 %v1875_v26 }
 0xc4d   : > { %v2546_v27 = vpop.eup %2545 }
 0xc4e   : > { %v1877_v29 = vmul.f32 %v2546_v27, %v1869_v12 }
 0xc50   : > { %v1884_v31 = vmul.f32 %v2242_v28, %v1877_v29 }
 0xc52   : > { %v1891_v32 = vadd.f32 %v2243_v30, %v1884_v31 }
 0xc54   : > { %2409 = vmatmul.mubr.msk.f32.vlgmr.msra.gmra.mxu0 %vm600_vm0, %v1891_v32 }
 0xd14   : > { %v1980_v37 = vpop.f32.mrf.mxu0 }
 0xd15   : > { %v1981_v38 = vadd.f32 %v2244_v36, %v1980_v37 }
 0xd16   : > { %v2410_v39 = vpop.f32.mrf.mxu0 }
 0xd17   : > { %v1984_v40 = vmax.f32 %v1981_v38, 0.0 }
 0xd19   : > { %2428 = vmatmul.mubr.msk.f32.vlgmr.msra.gmra.mxu1 %vm1985_vm3, %v1984_v40 }
 0xdd9   : > { %v2055_v41 = vpop.f32.mrf.mxu1 }
 0xdda   : > { %v2059_v16 = vadd.f32 %v2055_v41, %v3169_v8 }
 0xddb   : > { %v2429_v43 = vpop.f32.mrf.mxu1 }
 0xddc   : > { %v2067_v44 = vadd.f32 %v2247_v42, %v2059_v16 }
 0xdde   : > { %2068 = vst.msk [vmem:[%s592_s22] sm:$0xff] %vm600_vm0, %v2067_v44 }
 0xddf   : > { %2668 = shalt.err (!%p2665_p1)
}
 0xde0   : > { %s2669_s0 = scalar_lea.hbm %s2082_s10, 128  ;;  %s2673_s7 = scalar_lea.hbm %s3319_s27, 256 }
 0xde1   : > { %p2670_p2 = scmp.ne.s32.totalorder %s2082_s10, %s2669_s0  ;;  %p2674_p11 = scmp.lt.s32.totalorder %s2082_s10, %s3319_s27 }
 0xde2   : > { %p2675_p0 = scmp.lt.s32.totalorder %s2673_s7, %s2669_s0 }
 0xde3   : > { %p2671_p6 = pnand %p2670_p2, %p2932_p9 }
 0xde4   : > { %p2676_p12 = por %p2675_p0, %p2674_p11 }
 0xde5   : > { %p2672_p8 = pneg %p2671_p6 }
 0xde7   : > { %p2677_p4 = pnand %p2676_p12, %p2672_p8 }
 0xde9   : > { %2680 = shalt.err (!%p2677_p4)
}
 0xdea   : > { %2442 = dma.vmem_to_hbm [thread:$0]  (%p2932_p9), %s2085_s28, 128, %s2082_s10, %s2070_s16  }
 0xdeb PF: > { %s3320_s14 = sld [smem:[#allocation18_spill]]  ;;  %p3323_p7 = scmp.ge.s32.totalorder %s2747_s23, 2 }
 0xdec   : > { %s3321_s22 = sld [smem:[#allocation21_spill]] }
 0xdf1   : > { %s2096_s24 = sand.u32 1, %s3320_s14  }
 0xdf2   : > { %p3322_p3 = scmp.ne.s32.totalorder %s3321_s22, 0  ;;  %s2097_s26 = scalar_lea.sflag [#allocation6], %s2096_s24 }
 0xdf4   : > { %p2459_p13 = pnand %p3323_p7, %p3322_p3 }
 0xdf6   : > { %p2460_p5 = pneg %p2459_p13 }
 0xdf8   : > { %2722 = dma.done.wait (%p2460_p5), %s2097_s26, 128  }
 0xdf9   : > { %2724 = vsyncadd (%p2460_p5), %s2097_s26, 4294967168  ;;  %s35_s23 = sadd.s32 1, %s2747_s23   ;;  %s3324_s21 = sld [smem:[#allocation20_spill]] }
 0xdfa   : > { %p32_p10 = scmp.ge.s32.totalorder %s35_s23, 4   ;;  %s3325_s22 = sld [smem:[#allocation22_spill]] }
 0xdfb   : > { %s3326_s18 = smov %s2731_s19  ;;  %s3327_s19 = smov %s2735_s20 }
 0xdfc   : > { %s3328_s20 = smov %s2941_s29  ;;  %34 = sbr.rel (!%p32_p10) target bundleno = 18 (0x12), region = 150 }
 0xe01   :  { %2102 = vsyncpa [#allocation5], 1 }
 0xe02   :  { %2104 = vsyncpa [#allocation5 + $0x1], 1 }
 0xe03   :  { %2105 = vsyncpa [#allocation8], 1 }
 0xe04   :  { %2107 = vsyncpa [#allocation8 + $0x1], 1 }
 0xe05   :  { %2108 = vsyncpa [#allocation11], 1 }
 0xe06   :  { %2109 = vsyncpa [#allocation6], 1 }
 0xe07   :  { %2111 = vsyncpa [#allocation6 + $0x1], 1 }

</bundles_post_ra>
